<compile_context>
chip_gen: v7x
topology: tpu7x:2x2x1
jax: 0.10.0
libtpu: 0.0.40
codegen_flags: <defaults>
</compile_context>

<pallas_src>
import jax
import jax.numpy as jnp
import numpy as np
from jax.experimental import pallas as pl
from jax.experimental.pallas import tpu as pltpu


# ----------------------------------------------------------------------------
# Fused whole-network kernel (one grid step = one image)
# ----------------------------------------------------------------------------
def _net_kernel(x_ref,                                   # (30, 30)  input image
                band1_ref, bias1_ref,                    # (3,30,168), (1,168)
                colsel1_ref, rowsel1_ref,                # (2,168,84), (2,14,28)
                band2_ref, bias2_ref,                    # (3,84,192), (1,192)
                colsel2_ref, rowsel2_ref,                # (2,192,96), (2,6,12)
                wfc1_ref, bfc1_ref,                      # (576,120), (1,120)
                wfc2_ref, bfc2_ref,                      # (120,84),  (1,84)
                wfc3_ref, bfc3_ref,                      # (84,10),   (1,10)
                o_ref,                                   # (1, 10)
                p1_s, p2_s):                             # VMEM scratch
    f32 = jnp.float32

    # conv1 (1->6, 3x3) + bias + ReLU : banded matmuls over W, summed over kh.
    acc1 = bias1_ref[...]                                # (1,168) -> broadcast
    for kh in range(3):
        acc1 = acc1 + jnp.dot(x_ref[kh:kh + 28, :], band1_ref[kh],
                              preferred_element_type=f32)
    h1 = jnp.maximum(acc1, 0.0)                          # (28, 168) [i, j*6+c]

    # maxpool 2x2 #1 : column phase then row phase via 0/1 selection matmuls.
    cmax1 = jnp.maximum(
        jnp.dot(h1, colsel1_ref[0], preferred_element_type=f32),
        jnp.dot(h1, colsel1_ref[1], preferred_element_type=f32))     # (28, 84)
    p1_s[...] = jnp.maximum(
        jnp.dot(rowsel1_ref[0], cmax1, preferred_element_type=f32),
        jnp.dot(rowsel1_ref[1], cmax1, preferred_element_type=f32))  # (14, 84)

    # conv2 (6->16, 3x3) + bias + ReLU.
    acc2 = bias2_ref[...]                                # (1,192) -> broadcast
    for kh in range(3):
        acc2 = acc2 + jnp.dot(p1_s[kh:kh + 12, :], band2_ref[kh],
                              preferred_element_type=f32)
    h2 = jnp.maximum(acc2, 0.0)                          # (12, 192) [i, j*16+c]

    # maxpool 2x2 #2.
    cmax2 = jnp.maximum(
        jnp.dot(h2, colsel2_ref[0], preferred_element_type=f32),
        jnp.dot(h2, colsel2_ref[1], preferred_element_type=f32))     # (12, 96)
    p2_s[...] = jnp.maximum(
        jnp.dot(rowsel2_ref[0], cmax2, preferred_element_type=f32),
        jnp.dot(rowsel2_ref[1], cmax2, preferred_element_type=f32))  # (6, 96)

    # fc1 (576->120) + ReLU.  The torch CHW flatten is folded into the
    # row permutation of wfc1 (done once at init); the contraction over the
    # 6 spatial rows of p2 is a sum of 6 skinny matmuls.
    f1 = bfc1_ref[...]                                   # (1, 120)
    for i in range(6):
        f1 = f1 + jnp.dot(p2_s[i:i + 1, :], wfc1_ref[i * 96:(i + 1) * 96, :],
                          preferred_element_type=f32)
    f1 = jnp.maximum(f1, 0.0)

    # fc2 (120->84) + ReLU, fc3 (84->10).
    f2 = jnp.maximum(
        jnp.dot(f1, wfc2_ref[...], preferred_element_type=f32) + bfc2_ref[...],
        0.0)                                             # (1, 84)
    o_ref[...] = (jnp.dot(f2, wfc3_ref[...], preferred_element_type=f32)
                  + bfc3_ref[...])                       # (1, 10)


def net_forward_pallas(x_nchw, p):
    """Forward pass of Net.  x_nchw: (N, 1, 30, 30) float32 -> (N, 10)."""
    n = x_nchw.shape[0]
    assert x_nchw.shape[1:] == (1, 30, 30), x_nchw.shape
    x3 = x_nchw[:, 0, :, :]                              # (N, 30, 30), Cin = 1

    const2 = lambda i: (0, 0)
    const3 = lambda i: (0, 0, 0)

    out = pl.pallas_call(
        _net_kernel,
        out_shape=jax.ShapeDtypeStruct((n, 1, 10), jnp.float32),
        grid=(n,),
        in_specs=[
            pl.BlockSpec((None, 30, 30), lambda i: (i, 0, 0)),   # x (per image)
            pl.BlockSpec((3, 30, 168), const3),                  # conv1 band
            pl.BlockSpec((1, 168), const2),                      # conv1 bias row
            pl.BlockSpec((2, 168, 84), const3),                  # pool1 col select
            pl.BlockSpec((2, 14, 28), const3),                   # pool1 row select
            pl.BlockSpec((3, 84, 192), const3),                  # conv2 band
            pl.BlockSpec((1, 192), const2),                      # conv2 bias row
            pl.BlockSpec((2, 192, 96), const3),                  # pool2 col select
            pl.BlockSpec((2, 6, 12), const3),                    # pool2 row select
            pl.BlockSpec((576, 120), const2),                    # fc1 weight (permuted)
            pl.BlockSpec((1, 120), const2),                      # fc1 bias
            pl.BlockSpec((120, 84), const2),                     # fc2 weight (pre-T)
            pl.BlockSpec((1, 84), const2),                       # fc2 bias
            pl.BlockSpec((84, 10), const2),                      # fc3 weight (pre-T)
            pl.BlockSpec((1, 10), const2),                       # fc3 bias
        ],
        out_specs=pl.BlockSpec((None, 1, 10), lambda i: (i, 0, 0)),
        scratch_shapes=[pltpu.VMEM((14, 84), jnp.float32),       # pooled conv1
                        pltpu.VMEM((6, 96), jnp.float32)],       # pooled conv2
        compiler_params=pltpu.CompilerParams(
            dimension_semantics=("parallel",)),
    )(x3, p["B1"], p["b1r"], p["T1"], p["S1"],
      p["B2"], p["b2r"], p["T2"], p["S2"],
      p["wf1"], p["bf1r"], p["wf2"], p["bf2r"], p["wf3"], p["bf3r"])
    return out.reshape(n, 10)


# ----------------------------------------------------------------------------
# One-time (host-side) weight packing: conv band matrices, pool selection
# matrices, flatten-permuted / pre-transposed fc weights, tiled bias rows.
# ----------------------------------------------------------------------------
def _conv_band(w_torch, w_in):
    """w_torch: (Cout,Cin,K,K) -> (K, w_in*Cin, (w_in-K+1)*Cout) band matrices."""
    w = np.asarray(w_torch, np.float32)
    cout, cin, k, _ = w.shape
    wo = w_in - k + 1
    band = np.zeros((k, w_in * cin, wo * cout), np.float32)
    for kh in range(k):
        for kw in range(k):
            blk = w[:, :, kh, kw].T                       # (cin, cout)
            for j in range(wo):
                band[kh, (j + kw) * cin:(j + kw + 1) * cin,
                     j * cout:(j + 1) * cout] = blk
    return band


def _pool_col_select(w, c):
    """0/1 matrices selecting even/odd column-phase of a (rows, w*c) map."""
    t = np.zeros((2, w * c, (w // 2) * c), np.float32)
    for dj in range(2):
        for j in range(w // 2):
            for ch in range(c):
                t[dj, (2 * j + dj) * c + ch, j * c + ch] = 1.0
    return t


def _pool_row_select(h):
    """0/1 matrices selecting even/odd row-phase (left-multiplication)."""
    s = np.zeros((2, h // 2, h), np.float32)
    for di in range(2):
        for i in range(h // 2):
            s[di, i, 2 * i + di] = 1.0
    return s


def pack_params(tp):
    w1, b1 = np.asarray(tp["w1"]), np.asarray(tp["b1"])
    w2, b2 = np.asarray(tp["w2"]), np.asarray(tp["b2"])
    wfc1, bfc1 = np.asarray(tp["wfc1"]), np.asarray(tp["bfc1"])
    wfc2, bfc2 = np.asarray(tp["wfc2"]), np.asarray(tp["bfc2"])
    wfc3, bfc3 = np.asarray(tp["wfc3"]), np.asarray(tp["bfc3"])

    # fc1 rows re-ordered from torch (c,h,w) flatten to our (h, w, c) layout.
    wf1p = wfc1.reshape(120, 16, 6, 6).transpose(2, 3, 1, 0).reshape(576, 120)

    packed = dict(
        B1=_conv_band(w1, 30),                 # (3, 30, 168)
        b1r=np.tile(b1, 28)[None, :],          # (1, 168)
        T1=_pool_col_select(28, 6),            # (2, 168, 84)
        S1=_pool_row_select(28),               # (2, 14, 28)
        B2=_conv_band(w2, 14),                 # (3, 84, 192)
        b2r=np.tile(b2, 12)[None, :],          # (1, 192)
        T2=_pool_col_select(12, 16),           # (2, 192, 96)
        S2=_pool_row_select(12),               # (2, 6, 12)
        wf1=wf1p,                              # (576, 120)
        bf1r=bfc1[None, :],                    # (1, 120)
        wf2=wfc2.T.copy(),                     # (120, 84)
        bf2r=bfc2[None, :],                    # (1, 84)
        wf3=wfc3.T.copy(),                     # (84, 10)
        bf3r=bfc3[None, :],                    # (1, 10)
    )
    return {k: jnp.asarray(v, jnp.float32) for k, v in packed.items()}


# ----------------------------------------------------------------------------
# Pure-JAX reference (direct torch semantics, raw torch-layout params)
# ----------------------------------------------------------------------------
def _conv2d_ref(x_nhwc, w, b):
    k = w.shape[2]
    ho = x_nhwc.shape[1] - k + 1
    wo = x_nhwc.shape[2] - k + 1
    cols = [x_nhwc[:, i:i + ho, j:j + wo, :] for i in range(k) for j in range(k)]
    p = jnp.concatenate(cols, axis=-1)                   # (..., k*k*Cin)
    wm = jnp.transpose(w, (2, 3, 1, 0)).reshape(k * k * w.shape[1], w.shape[0])
    return jnp.einsum("nhwq,qo->nhwo", p, wm) + b


def _maxpool2x2_ref(x):
    return jnp.maximum(
        jnp.maximum(x[:, 0::2, 0::2, :], x[:, 0::2, 1::2, :]),
        jnp.maximum(x[:, 1::2, 0::2, :], x[:, 1::2, 1::2, :]))


def net_forward_ref(x_nchw, tp):
    n = x_nchw.shape[0]
    x = jnp.transpose(x_nchw, (0, 2, 3, 1))              # NHWC
    h = _maxpool2x2_ref(jax.nn.relu(_conv2d_ref(x, tp["w1"], tp["b1"])))
    h = _maxpool2x2_ref(jax.nn.relu(_conv2d_ref(h, tp["w2"], tp["b2"])))
    flat = jnp.transpose(h, (0, 3, 1, 2)).reshape(n, -1)  # torch NCHW .view order
    f1 = jax.nn.relu(flat @ tp["wfc1"].T + tp["bfc1"])
    f2 = jax.nn.relu(f1 @ tp["wfc2"].T + tp["bfc2"])
    return f2 @ tp["wfc3"].T + tp["bfc3"]


# ----------------------------------------------------------------------------
# Deterministic torch-layout parameter init
# ----------------------------------------------------------------------------
def init_torch_params(key):
    ks = jax.random.split(key, 10)
    return dict(
        w1=0.2 * jax.random.normal(ks[0], (6, 1, 3, 3), jnp.float32),
        b1=0.1 * jax.random.normal(ks[1], (6,), jnp.float32),
        w2=0.2 * jax.random.normal(ks[2], (16, 6, 3, 3), jnp.float32),
        b2=0.1 * jax.random.normal(ks[3], (16,), jnp.float32),
        wfc1=0.1 * jax.random.normal(ks[4], (120, 576), jnp.float32),
        bfc1=0.1 * jax.random.normal(ks[5], (120,), jnp.float32),
        wfc2=0.1 * jax.random.normal(ks[6], (84, 120), jnp.float32),
        bfc2=0.1 * jax.random.normal(ks[7], (84,), jnp.float32),
        wfc3=0.1 * jax.random.normal(ks[8], (10, 84), jnp.float32),
        bfc3=0.1 * jax.random.normal(ks[9], (10,), jnp.float32),
    )


if __name__ == "__main__":
    key = jax.random.PRNGKey(0)
    kx, kp = jax.random.split(key)

    # Input: batch=2, 1 channel, 30x30 spatial (so that 16*6*6 = 576 fits fc1).
    x = jax.random.normal(kx, (2, 1, 30, 30), jnp.float32)
    torch_params = init_torch_params(kp)
    packed = pack_params(torch_params)

    fwd = jax.jit(net_forward_pallas)
    out = jax.block_until_ready(fwd(x, packed))

    ref = net_forward_ref(x, torch_params)
    assert out.shape == (2, 10), out.shape
    assert jnp.allclose(out, ref, rtol=1e-2, atol=1e-2), (
        "Pallas output mismatch vs pure-JAX reference")

    print("KERNEL_OK")
</pallas_src>

<mosaic_0001>
module attributes {stable_mosaic.version = 11 : i64} {
  func.func @_net_kernel(%arg0: i32, %arg1: memref<1x30x30xf32, #tpu.memory_space<vmem>>, %arg2: memref<3x30x168xf32, #tpu.memory_space<vmem>>, %arg3: memref<1x168xf32, #tpu.memory_space<vmem>>, %arg4: memref<2x168x84xf32, #tpu.memory_space<vmem>>, %arg5: memref<2x14x28xf32, #tpu.memory_space<vmem>>, %arg6: memref<3x84x192xf32, #tpu.memory_space<vmem>>, %arg7: memref<1x192xf32, #tpu.memory_space<vmem>>, %arg8: memref<2x192x96xf32, #tpu.memory_space<vmem>>, %arg9: memref<2x6x12xf32, #tpu.memory_space<vmem>>, %arg10: memref<576x120xf32, #tpu.memory_space<vmem>>, %arg11: memref<1x120xf32, #tpu.memory_space<vmem>>, %arg12: memref<120x84xf32, #tpu.memory_space<vmem>>, %arg13: memref<1x84xf32, #tpu.memory_space<vmem>>, %arg14: memref<84x10xf32, #tpu.memory_space<vmem>>, %arg15: memref<1x10xf32, #tpu.memory_space<vmem>>, %arg16: memref<1x1x10xf32, #tpu.memory_space<vmem>>, %arg17: memref<14x84xf32, #tpu.memory_space<vmem>>, %arg18: memref<6x96xf32, #tpu.memory_space<vmem>>) attributes {dimension_semantics = [#tpu.dimension_semantics<parallel>], iteration_bounds = array<i64: 2>, scalar_prefetch = 0 : i64, scratch_operands = 2 : i64, tpu.core_type = #tpu.core_type<tc>, window_params = [{transform_indices = @transform_0, window_bounds = array<i64: 1, 30, 30>}, {pipeline_mode = #tpu.pipeline_mode<synchronous>, transform_indices = @transform_1, window_bounds = array<i64: 3, 30, 168>}, {pipeline_mode = #tpu.pipeline_mode<synchronous>, transform_indices = @transform_2, window_bounds = array<i64: 1, 168>}, {pipeline_mode = #tpu.pipeline_mode<synchronous>, transform_indices = @transform_3, window_bounds = array<i64: 2, 168, 84>}, {pipeline_mode = #tpu.pipeline_mode<synchronous>, transform_indices = @transform_4, window_bounds = array<i64: 2, 14, 28>}, {pipeline_mode = #tpu.pipeline_mode<synchronous>, transform_indices = @transform_5, window_bounds = array<i64: 3, 84, 192>}, {pipeline_mode = #tpu.pipeline_mode<synchronous>, transform_indices = @transform_6, window_bounds = array<i64: 1, 192>}, {pipeline_mode = #tpu.pipeline_mode<synchronous>, transform_indices = @transform_7, window_bounds = array<i64: 2, 192, 96>}, {pipeline_mode = #tpu.pipeline_mode<synchronous>, transform_indices = @transform_8, window_bounds = array<i64: 2, 6, 12>}, {pipeline_mode = #tpu.pipeline_mode<synchronous>, transform_indices = @transform_9, window_bounds = array<i64: 576, 120>}, {pipeline_mode = #tpu.pipeline_mode<synchronous>, transform_indices = @transform_10, window_bounds = array<i64: 1, 120>}, {pipeline_mode = #tpu.pipeline_mode<synchronous>, transform_indices = @transform_11, window_bounds = array<i64: 120, 84>}, {pipeline_mode = #tpu.pipeline_mode<synchronous>, transform_indices = @transform_12, window_bounds = array<i64: 1, 84>}, {pipeline_mode = #tpu.pipeline_mode<synchronous>, transform_indices = @transform_13, window_bounds = array<i64: 84, 10>}, {pipeline_mode = #tpu.pipeline_mode<synchronous>, transform_indices = @transform_14, window_bounds = array<i64: 1, 10>}, {transform_indices = @transform_15, window_bounds = array<i64: 1, 1, 10>}]} {
    %c0 = arith.constant 0 : index
    %c0_0 = arith.constant 0 : index
    %0 = vector.load %arg3[%c0, %c0_0] : memref<1x168xf32, #tpu.memory_space<vmem>>, vector<1x168xf32>
    %c0_1 = arith.constant 0 : index
    %c0_2 = arith.constant 0 : index
    %c0_3 = arith.constant 0 : index
    %1 = vector.load %arg1[%c0_1, %c0_2, %c0_3] : memref<1x30x30xf32, #tpu.memory_space<vmem>>, vector<1x28x30xf32>
    %2 = vector.shape_cast %1 : vector<1x28x30xf32> to vector<28x30xf32>
    %c0_4 = arith.constant 0 : index
    %c0_5 = arith.constant 0 : index
    %c0_6 = arith.constant 0 : index
    %3 = vector.load %arg2[%c0_4, %c0_5, %c0_6] : memref<3x30x168xf32, #tpu.memory_space<vmem>>, vector<1x30x168xf32>
    %4 = vector.shape_cast %3 : vector<1x30x168xf32> to vector<30x168xf32>
    %cst = arith.constant dense<0.000000e+00> : vector<28x168xf32>
    %5 = tpu.matmul %2, %4, %cst {dimension_numbers = #tpu.dot_dimension_numbers<[1], [0], [0], [1], [0, 0, 1, 1], [], []>} : vector<28x30xf32>, vector<30x168xf32>, vector<28x168xf32> -> vector<28x168xf32>
    %6 = vector.broadcast %0 : vector<1x168xf32> to vector<28x168xf32>
    %7 = arith.addf %6, %5 : vector<28x168xf32>
    %c0_7 = arith.constant 0 : index
    %c1 = arith.constant 1 : index
    %c0_8 = arith.constant 0 : index
    %8 = vector.load %arg1[%c0_7, %c1, %c0_8] : memref<1x30x30xf32, #tpu.memory_space<vmem>>, vector<1x28x30xf32>
    %9 = vector.shape_cast %8 : vector<1x28x30xf32> to vector<28x30xf32>
    %c1_9 = arith.constant 1 : index
    %c0_10 = arith.constant 0 : index
    %c0_11 = arith.constant 0 : index
    %10 = vector.load %arg2[%c1_9, %c0_10, %c0_11] : memref<3x30x168xf32, #tpu.memory_space<vmem>>, vector<1x30x168xf32>
    %11 = vector.shape_cast %10 : vector<1x30x168xf32> to vector<30x168xf32>
    %cst_12 = arith.constant dense<0.000000e+00> : vector<28x168xf32>
    %12 = tpu.matmul %9, %11, %cst_12 {dimension_numbers = #tpu.dot_dimension_numbers<[1], [0], [0], [1], [0, 0, 1, 1], [], []>} : vector<28x30xf32>, vector<30x168xf32>, vector<28x168xf32> -> vector<28x168xf32>
    %13 = arith.addf %7, %12 : vector<28x168xf32>
    %c0_13 = arith.constant 0 : index
    %c2 = arith.constant 2 : index
    %c0_14 = arith.constant 0 : index
    %14 = vector.load %arg1[%c0_13, %c2, %c0_14] : memref<1x30x30xf32, #tpu.memory_space<vmem>>, vector<1x28x30xf32>
    %15 = vector.shape_cast %14 : vector<1x28x30xf32> to vector<28x30xf32>
    %c2_15 = arith.constant 2 : index
    %c0_16 = arith.constant 0 : index
    %c0_17 = arith.constant 0 : index
    %16 = vector.load %arg2[%c2_15, %c0_16, %c0_17] : memref<3x30x168xf32, #tpu.memory_space<vmem>>, vector<1x30x168xf32>
    %17 = vector.shape_cast %16 : vector<1x30x168xf32> to vector<30x168xf32>
    %cst_18 = arith.constant dense<0.000000e+00> : vector<28x168xf32>
    %18 = tpu.matmul %15, %17, %cst_18 {dimension_numbers = #tpu.dot_dimension_numbers<[1], [0], [0], [1], [0, 0, 1, 1], [], []>} : vector<28x30xf32>, vector<30x168xf32>, vector<28x168xf32> -> vector<28x168xf32>
    %19 = arith.addf %13, %18 : vector<28x168xf32>
    %cst_19 = arith.constant 0.000000e+00 : f32
    %20 = vector.broadcast %cst_19 : f32 to vector<28x168xf32>
    %21 = arith.maximumf %19, %20 : vector<28x168xf32>
    %c0_20 = arith.constant 0 : index
    %c0_21 = arith.constant 0 : index
    %c0_22 = arith.constant 0 : index
    %22 = vector.load %arg4[%c0_20, %c0_21, %c0_22] : memref<2x168x84xf32, #tpu.memory_space<vmem>>, vector<1x168x84xf32>
    %23 = vector.shape_cast %22 : vector<1x168x84xf32> to vector<168x84xf32>
    %cst_23 = arith.constant dense<0.000000e+00> : vector<28x84xf32>
    %24 = tpu.matmul %21, %23, %cst_23 {dimension_numbers = #tpu.dot_dimension_numbers<[1], [0], [0], [1], [0, 0, 1, 1], [], []>} : vector<28x168xf32>, vector<168x84xf32>, vector<28x84xf32> -> vector<28x84xf32>
    %c1_24 = arith.constant 1 : index
    %c0_25 = arith.constant 0 : index
    %c0_26 = arith.constant 0 : index
    %25 = vector.load %arg4[%c1_24, %c0_25, %c0_26] : memref<2x168x84xf32, #tpu.memory_space<vmem>>, vector<1x168x84xf32>
    %26 = vector.shape_cast %25 : vector<1x168x84xf32> to vector<168x84xf32>
    %cst_27 = arith.constant dense<0.000000e+00> : vector<28x84xf32>
    %27 = tpu.matmul %21, %26, %cst_27 {dimension_numbers = #tpu.dot_dimension_numbers<[1], [0], [0], [1], [0, 0, 1, 1], [], []>} : vector<28x168xf32>, vector<168x84xf32>, vector<28x84xf32> -> vector<28x84xf32>
    %28 = arith.maximumf %24, %27 : vector<28x84xf32>
    %c0_28 = arith.constant 0 : index
    %c0_29 = arith.constant 0 : index
    %c0_30 = arith.constant 0 : index
    %29 = vector.load %arg5[%c0_28, %c0_29, %c0_30] : memref<2x14x28xf32, #tpu.memory_space<vmem>>, vector<1x14x28xf32>
    %30 = vector.shape_cast %29 : vector<1x14x28xf32> to vector<14x28xf32>
    %cst_31 = arith.constant dense<0.000000e+00> : vector<14x84xf32>
    %31 = tpu.matmul %30, %28, %cst_31 {dimension_numbers = #tpu.dot_dimension_numbers<[1], [0], [0], [1], [0, 0, 1, 1], [], []>} : vector<14x28xf32>, vector<28x84xf32>, vector<14x84xf32> -> vector<14x84xf32>
    %c1_32 = arith.constant 1 : index
    %c0_33 = arith.constant 0 : index
    %c0_34 = arith.constant 0 : index
    %32 = vector.load %arg5[%c1_32, %c0_33, %c0_34] : memref<2x14x28xf32, #tpu.memory_space<vmem>>, vector<1x14x28xf32>
    %33 = vector.shape_cast %32 : vector<1x14x28xf32> to vector<14x28xf32>
    %cst_35 = arith.constant dense<0.000000e+00> : vector<14x84xf32>
    %34 = tpu.matmul %33, %28, %cst_35 {dimension_numbers = #tpu.dot_dimension_numbers<[1], [0], [0], [1], [0, 0, 1, 1], [], []>} : vector<14x28xf32>, vector<28x84xf32>, vector<14x84xf32> -> vector<14x84xf32>
    %35 = arith.maximumf %31, %34 : vector<14x84xf32>
    %c0_36 = arith.constant 0 : index
    %c0_37 = arith.constant 0 : index
    %36 = vector.load %arg17[%c0_36, %c0_37] : memref<14x84xf32, #tpu.memory_space<vmem>>, vector<14x84xf32>
    tpu.vector_store %arg17[%c0_36, %c0_37], %35 {strides = array<i32>} : memref<14x84xf32, #tpu.memory_space<vmem>>, vector<14x84xf32>,
    %c0_38 = arith.constant 0 : index
    %c0_39 = arith.constant 0 : index
    %37 = vector.load %arg7[%c0_38, %c0_39] : memref<1x192xf32, #tpu.memory_space<vmem>>, vector<1x192xf32>
    %c0_40 = arith.constant 0 : index
    %c0_41 = arith.constant 0 : index
    %38 = vector.load %arg17[%c0_40, %c0_41] : memref<14x84xf32, #tpu.memory_space<vmem>>, vector<12x84xf32>
    %c0_42 = arith.constant 0 : index
    %c0_43 = arith.constant 0 : index
    %c0_44 = arith.constant 0 : index
    %39 = vector.load %arg6[%c0_42, %c0_43, %c0_44] : memref<3x84x192xf32, #tpu.memory_space<vmem>>, vector<1x84x192xf32>
    %40 = vector.shape_cast %39 : vector<1x84x192xf32> to vector<84x192xf32>
    %cst_45 = arith.constant dense<0.000000e+00> : vector<12x192xf32>
    %41 = tpu.matmul %38, %40, %cst_45 {dimension_numbers = #tpu.dot_dimension_numbers<[1], [0], [0], [1], [0, 0, 1, 1], [], []>} : vector<12x84xf32>, vector<84x192xf32>, vector<12x192xf32> -> vector<12x192xf32>
    %42 = vector.broadcast %37 : vector<1x192xf32> to vector<12x192xf32>
    %43 = arith.addf %42, %41 : vector<12x192xf32>
    %c1_46 = arith.constant 1 : index
    %c0_47 = arith.constant 0 : index
    %44 = vector.load %arg17[%c1_46, %c0_47] : memref<14x84xf32, #tpu.memory_space<vmem>>, vector<12x84xf32>
    %c1_48 = arith.constant 1 : index
    %c0_49 = arith.constant 0 : index
    %c0_50 = arith.constant 0 : index
    %45 = vector.load %arg6[%c1_48, %c0_49, %c0_50] : memref<3x84x192xf32, #tpu.memory_space<vmem>>, vector<1x84x192xf32>
    %46 = vector.shape_cast %45 : vector<1x84x192xf32> to vector<84x192xf32>
    %cst_51 = arith.constant dense<0.000000e+00> : vector<12x192xf32>
    %47 = tpu.matmul %44, %46, %cst_51 {dimension_numbers = #tpu.dot_dimension_numbers<[1], [0], [0], [1], [0, 0, 1, 1], [], []>} : vector<12x84xf32>, vector<84x192xf32>, vector<12x192xf32> -> vector<12x192xf32>
    %48 = arith.addf %43, %47 : vector<12x192xf32>
    %c2_52 = arith.constant 2 : index
    %c0_53 = arith.constant 0 : index
    %49 = vector.load %arg17[%c2_52, %c0_53] : memref<14x84xf32, #tpu.memory_space<vmem>>, vector<12x84xf32>
    %c2_54 = arith.constant 2 : index
    %c0_55 = arith.constant 0 : index
    %c0_56 = arith.constant 0 : index
    %50 = vector.load %arg6[%c2_54, %c0_55, %c0_56] : memref<3x84x192xf32, #tpu.memory_space<vmem>>, vector<1x84x192xf32>
    %51 = vector.shape_cast %50 : vector<1x84x192xf32> to vector<84x192xf32>
    %cst_57 = arith.constant dense<0.000000e+00> : vector<12x192xf32>
    %52 = tpu.matmul %49, %51, %cst_57 {dimension_numbers = #tpu.dot_dimension_numbers<[1], [0], [0], [1], [0, 0, 1, 1], [], []>} : vector<12x84xf32>, vector<84x192xf32>, vector<12x192xf32> -> vector<12x192xf32>
    %53 = arith.addf %48, %52 : vector<12x192xf32>
    %cst_58 = arith.constant 0.000000e+00 : f32
    %54 = vector.broadcast %cst_58 : f32 to vector<12x192xf32>
    %55 = arith.maximumf %53, %54 : vector<12x192xf32>
    %c0_59 = arith.constant 0 : index
    %c0_60 = arith.constant 0 : index
    %c0_61 = arith.constant 0 : index
    %56 = vector.load %arg8[%c0_59, %c0_60, %c0_61] : memref<2x192x96xf32, #tpu.memory_space<vmem>>, vector<1x192x96xf32>
    %57 = vector.shape_cast %56 : vector<1x192x96xf32> to vector<192x96xf32>
    %cst_62 = arith.constant dense<0.000000e+00> : vector<12x96xf32>
    %58 = tpu.matmul %55, %57, %cst_62 {dimension_numbers = #tpu.dot_dimension_numbers<[1], [0], [0], [1], [0, 0, 1, 1], [], []>} : vector<12x192xf32>, vector<192x96xf32>, vector<12x96xf32> -> vector<12x96xf32>
    %c1_63 = arith.constant 1 : index
    %c0_64 = arith.constant 0 : index
    %c0_65 = arith.constant 0 : index
    %59 = vector.load %arg8[%c1_63, %c0_64, %c0_65] : memref<2x192x96xf32, #tpu.memory_space<vmem>>, vector<1x192x96xf32>
    %60 = vector.shape_cast %59 : vector<1x192x96xf32> to vector<192x96xf32>
    %cst_66 = arith.constant dense<0.000000e+00> : vector<12x96xf32>
    %61 = tpu.matmul %55, %60, %cst_66 {dimension_numbers = #tpu.dot_dimension_numbers<[1], [0], [0], [1], [0, 0, 1, 1], [], []>} : vector<12x192xf32>, vector<192x96xf32>, vector<12x96xf32> -> vector<12x96xf32>
    %62 = arith.maximumf %58, %61 : vector<12x96xf32>
    %c0_67 = arith.constant 0 : index
    %c0_68 = arith.constant 0 : index
    %c0_69 = arith.constant 0 : index
    %63 = vector.load %arg9[%c0_67, %c0_68, %c0_69] : memref<2x6x12xf32, #tpu.memory_space<vmem>>, vector<1x6x12xf32>
    %64 = vector.shape_cast %63 : vector<1x6x12xf32> to vector<6x12xf32>
    %cst_70 = arith.constant dense<0.000000e+00> : vector<6x96xf32>
    %65 = tpu.matmul %64, %62, %cst_70 {dimension_numbers = #tpu.dot_dimension_numbers<[1], [0], [0], [1], [0, 0, 1, 1], [], []>} : vector<6x12xf32>, vector<12x96xf32>, vector<6x96xf32> -> vector<6x96xf32>
    %c1_71 = arith.constant 1 : index
    %c0_72 = arith.constant 0 : index
    %c0_73 = arith.constant 0 : index
    %66 = vector.load %arg9[%c1_71, %c0_72, %c0_73] : memref<2x6x12xf32, #tpu.memory_space<vmem>>, vector<1x6x12xf32>
    %67 = vector.shape_cast %66 : vector<1x6x12xf32> to vector<6x12xf32>
    %cst_74 = arith.constant dense<0.000000e+00> : vector<6x96xf32>
    %68 = tpu.matmul %67, %62, %cst_74 {dimension_numbers = #tpu.dot_dimension_numbers<[1], [0], [0], [1], [0, 0, 1, 1], [], []>} : vector<6x12xf32>, vector<12x96xf32>, vector<6x96xf32> -> vector<6x96xf32>
    %69 = arith.maximumf %65, %68 : vector<6x96xf32>
    %c0_75 = arith.constant 0 : index
    %c0_76 = arith.constant 0 : index
    %70 = vector.load %arg18[%c0_75, %c0_76] : memref<6x96xf32, #tpu.memory_space<vmem>>, vector<6x96xf32>
    tpu.vector_store %arg18[%c0_75, %c0_76], %69 {strides = array<i32>} : memref<6x96xf32, #tpu.memory_space<vmem>>, vector<6x96xf32>,
    %c0_77 = arith.constant 0 : index
    %c0_78 = arith.constant 0 : index
    %71 = vector.load %arg11[%c0_77, %c0_78] : memref<1x120xf32, #tpu.memory_space<vmem>>, vector<1x120xf32>
    %c0_79 = arith.constant 0 : index
    %c0_80 = arith.constant 0 : index
    %72 = vector.load %arg18[%c0_79, %c0_80] : memref<6x96xf32, #tpu.memory_space<vmem>>, vector<1x96xf32>
    %c0_81 = arith.constant 0 : index
    %c0_82 = arith.constant 0 : index
    %73 = vector.load %arg10[%c0_81, %c0_82] : memref<576x120xf32, #tpu.memory_space<vmem>>, vector<96x120xf32>
    %cst_83 = arith.constant dense<0.000000e+00> : vector<1x120xf32>
    %74 = tpu.matmul %72, %73, %cst_83 {dimension_numbers = #tpu.dot_dimension_numbers<[1], [0], [0], [1], [0, 0, 1, 1], [], []>} : vector<1x96xf32>, vector<96x120xf32>, vector<1x120xf32> -> vector<1x120xf32>
    %75 = arith.addf %71, %74 : vector<1x120xf32>
    %c1_84 = arith.constant 1 : index
    %c0_85 = arith.constant 0 : index
    %76 = vector.load %arg18[%c1_84, %c0_85] : memref<6x96xf32, #tpu.memory_space<vmem>>, vector<1x96xf32>
    %c96 = arith.constant 96 : index
    %c0_86 = arith.constant 0 : index
    %77 = vector.load %arg10[%c96, %c0_86] : memref<576x120xf32, #tpu.memory_space<vmem>>, vector<96x120xf32>
    %cst_87 = arith.constant dense<0.000000e+00> : vector<1x120xf32>
    %78 = tpu.matmul %76, %77, %cst_87 {dimension_numbers = #tpu.dot_dimension_numbers<[1], [0], [0], [1], [0, 0, 1, 1], [], []>} : vector<1x96xf32>, vector<96x120xf32>, vector<1x120xf32> -> vector<1x120xf32>
    %79 = arith.addf %75, %78 : vector<1x120xf32>
    %c2_88 = arith.constant 2 : index
    %c0_89 = arith.constant 0 : index
    %80 = vector.load %arg18[%c2_88, %c0_89] : memref<6x96xf32, #tpu.memory_space<vmem>>, vector<1x96xf32>
    %c192 = arith.constant 192 : index
    %c0_90 = arith.constant 0 : index
    %81 = vector.load %arg10[%c192, %c0_90] : memref<576x120xf32, #tpu.memory_space<vmem>>, vector<96x120xf32>
    %cst_91 = arith.constant dense<0.000000e+00> : vector<1x120xf32>
    %82 = tpu.matmul %80, %81, %cst_91 {dimension_numbers = #tpu.dot_dimension_numbers<[1], [0], [0], [1], [0, 0, 1, 1], [], []>} : vector<1x96xf32>, vector<96x120xf32>, vector<1x120xf32> -> vector<1x120xf32>
    %83 = arith.addf %79, %82 : vector<1x120xf32>
    %c3 = arith.constant 3 : index
    %c0_92 = arith.constant 0 : index
    %84 = vector.load %arg18[%c3, %c0_92] : memref<6x96xf32, #tpu.memory_space<vmem>>, vector<1x96xf32>
    %c288 = arith.constant 288 : index
    %c0_93 = arith.constant 0 : index
    %85 = vector.load %arg10[%c288, %c0_93] : memref<576x120xf32, #tpu.memory_space<vmem>>, vector<96x120xf32>
    %cst_94 = arith.constant dense<0.000000e+00> : vector<1x120xf32>
    %86 = tpu.matmul %84, %85, %cst_94 {dimension_numbers = #tpu.dot_dimension_numbers<[1], [0], [0], [1], [0, 0, 1, 1], [], []>} : vector<1x96xf32>, vector<96x120xf32>, vector<1x120xf32> -> vector<1x120xf32>
    %87 = arith.addf %83, %86 : vector<1x120xf32>
    %c4 = arith.constant 4 : index
    %c0_95 = arith.constant 0 : index
    %88 = vector.load %arg18[%c4, %c0_95] : memref<6x96xf32, #tpu.memory_space<vmem>>, vector<1x96xf32>
    %c384 = arith.constant 384 : index
    %c0_96 = arith.constant 0 : index
    %89 = vector.load %arg10[%c384, %c0_96] : memref<576x120xf32, #tpu.memory_space<vmem>>, vector<96x120xf32>
    %cst_97 = arith.constant dense<0.000000e+00> : vector<1x120xf32>
    %90 = tpu.matmul %88, %89, %cst_97 {dimension_numbers = #tpu.dot_dimension_numbers<[1], [0], [0], [1], [0, 0, 1, 1], [], []>} : vector<1x96xf32>, vector<96x120xf32>, vector<1x120xf32> -> vector<1x120xf32>
    %91 = arith.addf %87, %90 : vector<1x120xf32>
    %c5 = arith.constant 5 : index
    %c0_98 = arith.constant 0 : index
    %92 = vector.load %arg18[%c5, %c0_98] : memref<6x96xf32, #tpu.memory_space<vmem>>, vector<1x96xf32>
    %c480 = arith.constant 480 : index
    %c0_99 = arith.constant 0 : index
    %93 = vector.load %arg10[%c480, %c0_99] : memref<576x120xf32, #tpu.memory_space<vmem>>, vector<96x120xf32>
    %cst_100 = arith.constant dense<0.000000e+00> : vector<1x120xf32>
    %94 = tpu.matmul %92, %93, %cst_100 {dimension_numbers = #tpu.dot_dimension_numbers<[1], [0], [0], [1], [0, 0, 1, 1], [], []>} : vector<1x96xf32>, vector<96x120xf32>, vector<1x120xf32> -> vector<1x120xf32>
    %95 = arith.addf %91, %94 : vector<1x120xf32>
    %cst_101 = arith.constant 0.000000e+00 : f32
    %96 = vector.broadcast %cst_101 : f32 to vector<1x120xf32>
    %97 = arith.maximumf %95, %96 : vector<1x120xf32>
    %c0_102 = arith.constant 0 : index
    %c0_103 = arith.constant 0 : index
    %98 = vector.load %arg12[%c0_102, %c0_103] : memref<120x84xf32, #tpu.memory_space<vmem>>, vector<120x84xf32>
    %cst_104 = arith.constant dense<0.000000e+00> : vector<1x84xf32>
    %99 = tpu.matmul %97, %98, %cst_104 {dimension_numbers = #tpu.dot_dimension_numbers<[1], [0], [0], [1], [0, 0, 1, 1], [], []>} : vector<1x120xf32>, vector<120x84xf32>, vector<1x84xf32> -> vector<1x84xf32>
    %c0_105 = arith.constant 0 : index
    %c0_106 = arith.constant 0 : index
    %100 = vector.load %arg13[%c0_105, %c0_106] : memref<1x84xf32, #tpu.memory_space<vmem>>, vector<1x84xf32>
    %101 = arith.addf %99, %100 : vector<1x84xf32>
    %cst_107 = arith.constant 0.000000e+00 : f32
    %102 = vector.broadcast %cst_107 : f32 to vector<1x84xf32>
    %103 = arith.maximumf %101, %102 : vector<1x84xf32>
    %c0_108 = arith.constant 0 : index
    %c0_109 = arith.constant 0 : index
    %104 = vector.load %arg14[%c0_108, %c0_109] : memref<84x10xf32, #tpu.memory_space<vmem>>, vector<84x10xf32>
    %cst_110 = arith.constant dense<0.000000e+00> : vector<1x10xf32>
    %105 = tpu.matmul %103, %104, %cst_110 {dimension_numbers = #tpu.dot_dimension_numbers<[1], [0], [0], [1], [0, 0, 1, 1], [], []>} : vector<1x84xf32>, vector<84x10xf32>, vector<1x10xf32> -> vector<1x10xf32>
    %c0_111 = arith.constant 0 : index
    %c0_112 = arith.constant 0 : index
    %106 = vector.load %arg15[%c0_111, %c0_112] : memref<1x10xf32, #tpu.memory_space<vmem>>, vector<1x10xf32>
    %107 = arith.addf %105, %106 : vector<1x10xf32>
    %c0_113 = arith.constant 0 : index
    %c0_114 = arith.constant 0 : index
    %c0_115 = arith.constant 0 : index
    %108 = vector.load %arg16[%c0_113, %c0_114, %c0_115] : memref<1x1x10xf32, #tpu.memory_space<vmem>>, vector<1x1x10xf32>
    %109 = vector.shape_cast %108 : vector<1x1x10xf32> to vector<1x10xf32>
    %110 = vector.shape_cast %107 : vector<1x10xf32> to vector<1x1x10xf32>
    tpu.vector_store %arg16[%c0_113, %c0_114, %c0_115], %110 {strides = array<i32>} : memref<1x1x10xf32, #tpu.memory_space<vmem>>, vector<1x1x10xf32>,
    return
  }
  func.func @transform_0(%arg0: i32) -> (i32, i32, i32) {
    %c0_i32 = arith.constant 0 : i32
    %c0_i32_0 = arith.constant 0 : i32
    %c0_i32_1 = arith.constant 0 : i32
    return %arg0, %c0_i32, %c0_i32_0 : i32, i32, i32
  }
  func.func @transform_1(%arg0: i32) -> (i32, i32, i32) {
    %c0_i32 = arith.constant 0 : i32
    %c0_i32_0 = arith.constant 0 : i32
    %c0_i32_1 = arith.constant 0 : i32
    %c0_i32_2 = arith.constant 0 : i32
    return %c0_i32, %c0_i32_0, %c0_i32_1 : i32, i32, i32
  }
  func.func @transform_2(%arg0: i32) -> (i32, i32) {
    %c0_i32 = arith.constant 0 : i32
    %c0_i32_0 = arith.constant 0 : i32
    %c0_i32_1 = arith.constant 0 : i32
    return %c0_i32, %c0_i32_0 : i32, i32
  }
  func.func @transform_3(%arg0: i32) -> (i32, i32, i32) {
    %c0_i32 = arith.constant 0 : i32
    %c0_i32_0 = arith.constant 0 : i32
    %c0_i32_1 = arith.constant 0 : i32
    %c0_i32_2 = arith.constant 0 : i32
    return %c0_i32, %c0_i32_0, %c0_i32_1 : i32, i32, i32
  }
  func.func @transform_4(%arg0: i32) -> (i32, i32, i32) {
    %c0_i32 = arith.constant 0 : i32
    %c0_i32_0 = arith.constant 0 : i32
    %c0_i32_1 = arith.constant 0 : i32
    %c0_i32_2 = arith.constant 0 : i32
    return %c0_i32, %c0_i32_0, %c0_i32_1 : i32, i32, i32
  }
  func.func @transform_5(%arg0: i32) -> (i32, i32, i32) {
    %c0_i32 = arith.constant 0 : i32
    %c0_i32_0 = arith.constant 0 : i32
    %c0_i32_1 = arith.constant 0 : i32
    %c0_i32_2 = arith.constant 0 : i32
    return %c0_i32, %c0_i32_0, %c0_i32_1 : i32, i32, i32
  }
  func.func @transform_6(%arg0: i32) -> (i32, i32) {
    %c0_i32 = arith.constant 0 : i32
    %c0_i32_0 = arith.constant 0 : i32
    %c0_i32_1 = arith.constant 0 : i32
    return %c0_i32, %c0_i32_0 : i32, i32
  }
  func.func @transform_7(%arg0: i32) -> (i32, i32, i32) {
    %c0_i32 = arith.constant 0 : i32
    %c0_i32_0 = arith.constant 0 : i32
    %c0_i32_1 = arith.constant 0 : i32
    %c0_i32_2 = arith.constant 0 : i32
    return %c0_i32, %c0_i32_0, %c0_i32_1 : i32, i32, i32
  }
  func.func @transform_8(%arg0: i32) -> (i32, i32, i32) {
    %c0_i32 = arith.constant 0 : i32
    %c0_i32_0 = arith.constant 0 : i32
    %c0_i32_1 = arith.constant 0 : i32
    %c0_i32_2 = arith.constant 0 : i32
    return %c0_i32, %c0_i32_0, %c0_i32_1 : i32, i32, i32
  }
  func.func @transform_9(%arg0: i32) -> (i32, i32) {
    %c0_i32 = arith.constant 0 : i32
    %c0_i32_0 = arith.constant 0 : i32
    %c0_i32_1 = arith.constant 0 : i32
    return %c0_i32, %c0_i32_0 : i32, i32
  }
  func.func @transform_10(%arg0: i32) -> (i32, i32) {
    %c0_i32 = arith.constant 0 : i32
    %c0_i32_0 = arith.constant 0 : i32
    %c0_i32_1 = arith.constant 0 : i32
    return %c0_i32, %c0_i32_0 : i32, i32
  }
  func.func @transform_11(%arg0: i32) -> (i32, i32) {
    %c0_i32 = arith.constant 0 : i32
    %c0_i32_0 = arith.constant 0 : i32
    %c0_i32_1 = arith.constant 0 : i32
    return %c0_i32, %c0_i32_0 : i32, i32
  }
  func.func @transform_12(%arg0: i32) -> (i32, i32) {
    %c0_i32 = arith.constant 0 : i32
    %c0_i32_0 = arith.constant 0 : i32
    %c0_i32_1 = arith.constant 0 : i32
    return %c0_i32, %c0_i32_0 : i32, i32
  }
  func.func @transform_13(%arg0: i32) -> (i32, i32) {
    %c0_i32 = arith.constant 0 : i32
    %c0_i32_0 = arith.constant 0 : i32
    %c0_i32_1 = arith.constant 0 : i32
    return %c0_i32, %c0_i32_0 : i32, i32
  }
  func.func @transform_14(%arg0: i32) -> (i32, i32) {
    %c0_i32 = arith.constant 0 : i32
    %c0_i32_0 = arith.constant 0 : i32
    %c0_i32_1 = arith.constant 0 : i32
    return %c0_i32, %c0_i32_0 : i32, i32
  }
  func.func @transform_15(%arg0: i32) -> (i32, i32, i32) {
    %c0_i32 = arith.constant 0 : i32
    %c0_i32_0 = arith.constant 0 : i32
    %c0_i32_1 = arith.constant 0 : i32
    return %arg0, %c0_i32, %c0_i32_0 : i32, i32, i32
  }
}

</mosaic_0001>

<bundles_post_ra>
// kernel: net_forward_pallas.1
= control target key start
LH: loop header
LB: loop body
LE: loop exit
PB: predicated region body
PF: predicated region fallthrough
CT: control target
= control target key end

     0   :  { %s4994_s0 = inlined_call_operand.vmem [shape: f32[2,30,30], index: 0, kind: input, shape index: {}]   ;;  %s4995_s1 = inlined_call_operand.hbm [shape: f32[3,30,168], index: 1, kind: input, shape index: {}]   ;;  %s4996_s2 = inlined_call_operand.vmem [shape: f32[1,168], index: 2, kind: input, shape index: {}]   ;;  %s4997_s3 = inlined_call_operand.hbm [shape: f32[2,168,84], index: 3, kind: input, shape index: {}]   ;;  %s4998_s4 = inlined_call_operand.vmem [shape: f32[2,14,28], index: 4, kind: input, shape index: {}]   ;;  %s4999_s5 = inlined_call_operand.hbm [shape: f32[3,84,192], index: 5, kind: input, shape index: {}]   ;;  %s5000_s6 = inlined_call_operand.vmem [shape: f32[1,192], index: 6, kind: input, shape index: {}]   ;;  %s5001_s7 = inlined_call_operand.hbm [shape: f32[2,192,96], index: 7, kind: input, shape index: {}]   ;;  %s5002_s8 = inlined_call_operand.vmem [shape: f32[2,6,12], index: 8, kind: input, shape index: {}]   ;;  %s5003_s9 = inlined_call_operand.vmem [shape: f32[576,120], index: 9, kind: input, shape index: {}]   ;;  %s5004_s10 = inlined_call_operand.vmem [shape: f32[1,120], index: 10, kind: input, shape index: {}]   ;;  %s5005_s11 = inlined_call_operand.vmem [shape: f32[120,84], index: 11, kind: input, shape index: {}]   ;;  %s5006_s12 = inlined_call_operand.vmem [shape: f32[1,84], index: 12, kind: input, shape index: {}]   ;;  %s5007_s13 = inlined_call_operand.vmem [shape: f32[84,10], index: 13, kind: input, shape index: {}]   ;;  %s5008_s14 = inlined_call_operand.vmem [shape: f32[1,10], index: 14, kind: input, shape index: {}]   ;;  %s5009_s15 = inlined_call_operand.hbm [shape: f32[2,1,10], index: 15, kind: output, shape index: {}]  }
   0x1   :  { %5024 = sst [smem:[#allocation24_spill]] %s4997_s3 }
   0x2   :  { %5025 = sst [smem:[#allocation25_spill]] %s5006_s12 }
   0x3   :  { %5026 = sst [smem:[#allocation26_spill]] %s5008_s14 }
   0x4   :  { %5027 = sst [smem:[#allocation27_spill]] %s5009_s15 }
   0x5   :  { %20 = vsyncpa [#allocation5], 0 }
   0x6   :  { %21 = vsyncpa [#allocation8], 0 }
   0x7   :  { %22 = vsyncpa [#allocation11], 0 }
   0x8   :  { %23 = vsyncpa [#allocation6], 0 }
   0x9   :  { %25 = vsyncpa [#allocation6 + $0x1], 0  ;;  %s4183_s18 = smov 0   ;;  %s4185_s19 = smov 0  }
   0xa   :  { %s4187_s20 = smov 0   ;;  %s4189_s21 = smov 0  }
   0xb LB: > { %5028 = sst [smem:[#allocation17_spill]] %s4076_s18  ;;  %s4204_s22 = sadd.s32 4294967295, %s4088_s21   ;;  %s4088_s21 = sphi %s4189_s21, %s5063_s21   ;;  %s4084_s20 = sphi %s4187_s20, %s5065_s20   ;;  %s4080_s19 = sphi %s4185_s19, %s5067_s19   ;;  %s4076_s18 = sphi %s4183_s18, %s5066_s18  }
   0xc   : > { %5029 = sst [smem:[#allocation18_spill]] %s4084_s20  ;;  %s2912_s23 = sadd.s32 4294967294, %s4088_s21  }
   0xd   : > { %5030 = sst [smem:[#allocation19_spill]] %s4088_s21  ;;  %s4208_s24 = sadd.s32 1, %s4088_s21  }
   0xe   : > { %5031 = sst [smem:[#allocation20_spill]] %s4208_s24  ;;  %s358_s25 = sadd.s32 1, %s4084_s20 }
   0xf   : > { %s355_s26 = ssub.s32 %s4088_s21, %s4208_s24  ;;  %p368_p0 = scmp.ne.s32.totalorder %s4084_s20, %s4080_s19 }
  0x10   : > { %p356_p1 = scmp.eq.s32.totalorder %s355_s26, 0  ;;  %p369_p2 = scmp.eq.s32.totalorder %s4204_s22, 1 }
  0x11   : > { %p374_p3 = scmp.ne.s32.totalorder %s4080_s19, %s4076_s18  ;;  %p375_p4 = scmp.eq.s32.totalorder %s2912_s23, 1 }
  0x12   : > { %s4219_s27 = scalar_select %p356_p1, %s4084_s20, %s358_s25  }
  0x13   : > { %p4221_p5 = por %p369_p2, %p368_p0  ;;  %p4225_p6 = por %p375_p4, %p374_p3 }
  0x14   : > { %5032 = sst [smem:[#allocation21_spill]] %s4219_s27  ;;  %p2913_p7 = scmp.ge.s32.totalorder %s4088_s21, 1 }
  0x15   : > { %s5033_s28 = scalar_select %p4221_p5, 1, 0 }
  0x16   : > { %s5035_s29 = scalar_select %p4225_p6, 1, 0 }
  0x17   : > { %5034 = sst [smem:[#allocation22_spill]] %s5033_s28  ;;  %p382_p8 = scmp.lt.s32.totalorder %s4088_s21, 3 }
  0x18   : > { %5036 = sst [smem:[#allocation23_spill]] %s5035_s29  ;;  %p5016_p9 = scmp.eq.s32.totalorder %s4204_s22, 0 }
  0x19   : > { %p4232_p10 = pnand %p2913_p7, %p382_p8  ;;  %s4090_s16 = smov [#allocation7]  }
  0x1a   : > { %s410_s17 = sshll.u32 %s4090_s16, 4  ;;  %s4091_s25 = smov [#allocation4]   ;;  %s411_s17 = int_to_ptr.vmem [resolvable:$true] %s410_s17 }
  0x1b   : > { %s5037_s30 = scalar_select %p4232_p10, 1, 0 }
  0x1c   : > { %p3832_p11 = pneg %p4232_p10  ;;  %s394_s26 = sshll.u32 %s4091_s25, 4  ;;  %s4244_s26 = int_to_ptr.vmem [resolvable:$true] %s394_s26 }
  0x1d   : > { %s5039_s3 = sld [smem:[#allocation24_spill]] }
  0x1e   : > { %p4240_p12 = pnand %p5016_p9, %p3832_p11 }
  0x20   : > { %p4254_p0 = pneg %p4240_p12 }
  0x23   : > { %s3902_s24 = scalar_lea.hbm %s5039_s3, 5376 }
  0x24   : > { %p3903_p13 = scmp.ne.s32.totalorder %s5039_s3, %s3902_s24  ;;  %p3909_p3 = scmp.lt.u32.totalorder %s3902_s24, %s5039_s3 }
  0x26   : > { %p3905_p1 = pnand %p4254_p0, %p3903_p13 }
  0x28   : > { %p3906_p2 = pneg %p3905_p1 }
  0x2a   : > { %p3911_p4 = pnand %p3909_p3, %p3906_p2 }
  0x2c   : > { %3914 = shalt.err (!%p3911_p4)
}
  0x2d   : > { %s3915_s20 = scalar_lea.vmem %s411_s17, 5376  ;;  %p3923_p9 = scmp.lt.s32.totalorder %s411_s17, %s411_s17 }
  0x2e   : > { %p3916_p7 = scmp.ne.s32.totalorder %s411_s17, %s3915_s20  ;;  %p3924_p6 = scmp.lt.s32.totalorder %s3915_s20, %s3915_s20 }
  0x30   : > { %p3918_p8 = pnand %p3916_p7, %p4254_p0  ;;  %p3925_p5 = por %p3924_p6, %p3923_p9 }
  0x32   : > { %p3919_p11 = pneg %p3918_p8 }
  0x34   : > { %p3926_p10 = pnand %p3925_p5, %p3919_p11 }
  0x36   : > { %3929 = shalt.err (!%p3926_p10)
}
  0x37   : > { %s5022_s18 = smov 128   ;;  %s5023_s27 = smov 8  }
  0x38   : > { %3838 = dma.hbm_to_vmem [thread:$0]  (!%p4240_p12), %s5039_s3, 5376, %s411_s17, [#allocation8], %s5022_s18, %s5022_s18, %s5023_s27  }
  0x39   : > { %s3930_s15 = scalar_lea.hbm %s4995_s1, 3072 }
  0x3a   : > { %p3931_p5 = scmp.ne.s32.totalorder %s4995_s1, %s3930_s15  ;;  %p3937_p10 = scmp.lt.u32.totalorder %s3930_s15, %s4995_s1 }
  0x3c   : > { %p3933_p6 = pnand %p3931_p5, %p4254_p0 }
  0x3e   : > { %p3934_p9 = pneg %p3933_p6 }
  0x40   : > { %p3939_p13 = pnand %p3937_p10, %p3934_p9 }
  0x42   : > { %3942 = shalt.err (!%p3939_p13)
}
  0x43   : > { %s3943_s17 = scalar_lea.vmem %s4244_s26, 3072  ;;  %p3951_p4 = scmp.lt.s32.totalorder %s4244_s26, %s4244_s26 }
  0x44   : > { %p3944_p1 = scmp.ne.s32.totalorder %s4244_s26, %s3943_s17  ;;  %p3952_p7 = scmp.lt.s32.totalorder %s3943_s17, %s3943_s17 }
  0x46   : > { %p3946_p2 = pnand %p3944_p1, %p4254_p0  ;;  %p3953_p8 = por %p3952_p7, %p3951_p4 }
  0x48   : > { %p3947_p3 = pneg %p3946_p2 }
  0x4a   : > { %p3954_p11 = pnand %p3953_p8, %p3947_p3 }
  0x4c   : > { %3957 = shalt.err (!%p3954_p11)
}
  0x4d   : > { %s4094_s14 = smov 256   ;;  %s4095_s12 = smov 16  }
  0x4e   : > { %3835 = dma.hbm_to_vmem [thread:$0]  (!%p4240_p12), %s4995_s1, 3072, %s4244_s26, [#allocation5], %s4094_s14, %s4094_s14, %s4095_s12  }
  0x4f   : > { %s4096_s21 = smov [#allocation9]   ;;  %s4097_s29 = smov [#allocation10]  }
  0x50   : > { %s426_s24 = sshll.u32 %s4096_s21, 4  ;;  %s442_s25 = sshll.u32 %s4097_s29, 4  ;;  %s427_s24 = int_to_ptr.vmem [resolvable:$true] %s426_s24  ;;  %s4296_s25 = int_to_ptr.vmem [resolvable:$true] %s442_s25 }
  0x51   : > { %s3958_s18 = scalar_lea.hbm %s4999_s5, 8448 }
  0x52   : > { %p3959_p5 = scmp.ne.s32.totalorder %s4999_s5, %s3958_s18  ;;  %p3965_p10 = scmp.lt.u32.totalorder %s3958_s18, %s4999_s5 }
  0x54   : > { %p3961_p6 = pnand %p3959_p5, %p4254_p0 }
  0x56   : > { %p3962_p9 = pneg %p3961_p6 }
  0x58   : > { %p3967_p13 = pnand %p3965_p10, %p3962_p9 }
  0x5a   : > { %3970 = shalt.err (!%p3967_p13)
}
  0x5b   : > { %s3971_s28 = scalar_lea.vmem %s427_s24, 8448  ;;  %p3979_p4 = scmp.lt.s32.totalorder %s427_s24, %s427_s24 }
  0x5c   : > { %p3972_p1 = scmp.ne.s32.totalorder %s427_s24, %s3971_s28  ;;  %p3980_p7 = scmp.lt.s32.totalorder %s3971_s28, %s3971_s28 }
  0x5e   : > { %p3974_p2 = pnand %p3972_p1, %p4254_p0  ;;  %p3981_p8 = por %p3980_p7, %p3979_p4 }
  0x60   : > { %p3975_p3 = pneg %p3974_p2 }
  0x62   : > { %p3982_p11 = pnand %p3981_p8, %p3975_p3 }
  0x64   : > { %3985 = shalt.err (!%p3982_p11)
}
  0x65   : > { %3841 = dma.hbm_to_vmem [thread:$0]  (!%p4240_p12), %s4999_s5, 8448, %s427_s24, [#allocation8], %s4094_s14, %s4094_s14, %s4095_s12  }
  0x66   : > { %s3986_s29 = scalar_lea.hbm %s5001_s7, 6144 }
  0x67   : > { %p3987_p5 = scmp.ne.s32.totalorder %s5001_s7, %s3986_s29  ;;  %p3993_p10 = scmp.lt.u32.totalorder %s3986_s29, %s5001_s7 }
  0x69   : > { %p3989_p6 = pnand %p3987_p5, %p4254_p0 }
  0x6b   : > { %p3990_p9 = pneg %p3989_p6 }
  0x6d   : > { %p3995_p13 = pnand %p3993_p10, %p3990_p9 }
  0x6f   : > { %3998 = shalt.err (!%p3995_p13)
}
  0x70   : > { %s3999_s14 = scalar_lea.vmem %s4296_s25, 6144  ;;  %p4007_p4 = scmp.lt.s32.totalorder %s4296_s25, %s4296_s25 }
  0x71   : > { %p4000_p1 = scmp.ne.s32.totalorder %s4296_s25, %s3999_s14  ;;  %p4008_p7 = scmp.lt.s32.totalorder %s3999_s14, %s3999_s14 }
  0x73   : > { %p4002_p2 = pnand %p4000_p1, %p4254_p0  ;;  %p4009_p8 = por %p4008_p7, %p4007_p4 }
  0x75   : > { %p4003_p3 = pneg %p4002_p2 }
  0x77   : > { %p4010_p11 = pnand %p4009_p8, %p4003_p3 }
  0x79   : > { %4013 = shalt.err (!%p4010_p11)
}
  0x7a   : > { %s5041_s12 = smov 8   ;;  %s5042_s24 = smov 128  }
  0x7b   : > { %3844 = dma.hbm_to_vmem [thread:$0]  (!%p4240_p12), %s5001_s7, 6144, %s4296_s25, [#allocation11], %s5042_s24, %s5042_s24, %s5041_s12  }
  0x7c   : > { %p5043_p5 = scmp.ne.s32.totalorder %s5037_s30, 0 }
  0x7d   : > { %p5044_p0 = scmp.eq.s32.totalorder (!%p5043_p5), %s4204_s22, 0 }
  0x7e   : > { %487 = sbr.rel (%p5043_p5) target bundleno = 2375 (0x947), region = 80 }
  0x85   : > { %4059 = dma.done.wait (%p5044_p0), [#allocation5], 3072   ;;  %p5045_p6 = pmov %p5044_p0 }
  0x86   : > { %p5046_p9 = pmov %p5044_p0 }
  0x87   : > { %4061 = vsyncadd (%p5045_p6), [#allocation5], 4294964224 }
  0x88   : > { %4063 = dma.done.wait (%p5046_p9), [#allocation8], 13824   ;;  %p5047_p10 = pmov %p5044_p0 }
  0x89   : > { %p5048_p13 = pmov %p5044_p0 }
  0x8a   : > { %4065 = vsyncadd (%p5047_p10), [#allocation8], 4294953472 }
  0x8b   : > { %4067 = dma.done.wait (%p5048_p13), [#allocation11], 6144   ;;  %p5049_p12 = pmov %p5044_p0 }
  0x8c   : > { %v4098_v0 = vmov 0.0   ;;  %p546_p1 = scmp.lt.s32.totalorder %s4204_s22, 1  ;;  %v4099_v1 = vmov 0.0|0.0   ;;  %vm577_vm0 = vcmask 1045504   ;;  %v557_v2 = vld [vmem:[#allocation4 + $0x8] sm:$0xff]  ;;  %v559_v3 = vld [vmem:[#allocation4 + $0x18] sm:$0xff] }
  0x8d   : > { %4069 = vsyncadd (%p5049_p12), [#allocation11], 4294961152  ;;  %648 = vmatprep.mubr.f32.mxu0 %v4098_v0  ;;  %3404 = vmatprep.subr.bf16.mxu1 %v4099_v1  ;;  %v556_v4 = vld [vmem:[#allocation4] sm:$0xff]  ;;  %v3374_v5 = vpack.c.bf16 %v559_v3, %v557_v2  ;;  %v558_v6 = vld [vmem:[#allocation4 + $0x10] sm:$0xff]  ;;  %vm4100_vm1 = vmmov 1   ;;  %vm564_vm3 = vcmask 244736  }
  0x8e   : > { %s547_s30 = scalar_select %p546_p1, %s4204_s22, 1  ;;  %v561_v7 = vld [vmem:[#allocation4 + $0x28] sm:$0xff]  ;;  %v563_v8 = vld [vmem:[#allocation4 + $0x38] sm:$0x3f]  ;;  %v3376_v9 = vpack.c.bf16 %v558_v6, %v556_v4  ;;  %vm4361_vm2 = vmpackc.low %vm577_vm0, %vm4100_vm1  ;;  %vm977_vm4 = vcmask 326656   ;;  %vm1188_vm5 = vcmask 228352  }
  0x8f   : > { %v3378_v10 = vpack.c.bf16 %v563_v8, %v561_v7  ;;  %v560_v12 = vld [vmem:[#allocation4 + $0x20] sm:$0xff]  ;;  %v562_v13 = vld [vmem:[#allocation4 + $0x30] sm:$0x3f]  ;;  %3375 = vmatprep.subr.bf16.mxu0 %v3374_v5  ;;  %v698_v14 = vld [vmem:[#allocation4 + $0x48] sm:$0xff]  ;;  %vm1195_vm6 = vcmask 1043456   ;;  %vm1362_vm8 = vcmask 685056  }
  0x90   : > { %s2993_s23 = sshll.u32 %s547_s30, 5  ;;  %v700_v15 = vld [vmem:[#allocation4 + $0x58] sm:$0xff]  ;;  %3377 = vmatpush1.bf16.msra.mxu0 %v3376_v9  ;;  %v3381_v16 = vpack.c.bf16 %v562_v13, %v560_v12  ;;  %v697_v18 = vld [vmem:[#allocation4 + $0x40] sm:$0xff]  ;;  %v699_v19 = vld [vmem:[#allocation4 + $0x50] sm:$0xff]  ;;  %vm1360_vm9 = vcmask 687104   ;;  %vm1757_vm10 = vcmask 523264  }
  0x91   : > { %3380 = vmatprep.subr.msk.bf16.mxu0 %vm4361_vm2, %v3378_v10  ;;  %s4370_s27 = scalar_lea.vmem %s4994_s0, %s2993_s23  ;;  %v3384_v17 = vpack.c.bf16 %v700_v15, %v698_v14  ;;  %v702_v20 = vld [vmem:[#allocation4 + $0x68] sm:$0xff]  ;;  %v704_v21 = vld [vmem:[#allocation4 + $0x78] sm:$0x3f]  ;;  %v3386_v23 = vpack.c.bf16 %v699_v19, %v697_v18  ;;  %v701_v25 = vld [vmem:[#allocation4 + $0x60] sm:$0xff]  ;;  %vm4101_vm11 = vmmov 0   ;;  %vm1942_vm12 = vcmask 97280  }
  0x92   : > { %v552_v22 = vld [vmem:[%s4370_s27] sm:$0xff]  ;;  %v3388_v24 = vpack.c.bf16 %v704_v21, %v702_v20  ;;  %v703_v26 = vld [vmem:[#allocation4 + $0x70] sm:$0x3f]  ;;  %v828_v28 = vld [vmem:[#allocation4 + $0x98] sm:$0xff]  ;;  %vm2095_vm13 = vcmask 783360   ;;  %vm2111_vm14 = vcmask 785408  }
  0x93   : > { %v826_v27 = vld [vmem:[#allocation4 + $0x88] sm:$0xff]  ;;  %v553_v29 = vld [vmem:[%s4370_s27 + $0x8] sm:$0xff]  ;;  %v3391_v30 = vpack.c.bf16 %v703_v26, %v701_v25  ;;  %v956_v31 = vld [vmem:[#allocation7] sm:$0xff]  ;;  %vm2638_vm15 = vcmask 982016   ;;  %s5054_s30 = sld [smem:[#allocation25_spill]]  ;;  %s544_s16 = sand.u32 1, %s4080_s19  }
  0x94   : > { %3383 = vmatpush1.bf16.msk.msra.mxu0 %vm4361_vm2, %v3381_v16  ;;  %v957_v32 = vld [vmem:[#allocation7 + $0x8] sm:$0xff]  ;;  %v3394_v33 = vpack.c.bf16 %v828_v28, %v826_v27  ;;  %v958_v35 = vld [vmem:[#allocation7 + $0x10] sm:$0xff]  ;;  %v959_v36 = vld [vmem:[#allocation7 + $0x18] sm:$0xff]  ;;  %s5055_s23 = sld [smem:[#allocation22_spill]]  ;;  %s5056_s18 = sld [smem:[#allocation26_spill]]  ;;  %vm2801_vm0 = vcmask 73728  }
  0x95   : > { %3385 = vmatprep.subr.bf16.mxu0 %v3384_v17  ;;  %v3405_v34 = vpack.c.bf16 %v957_v32, %v956_v31  ;;  %v3408_v37 = vpack.c.bf16 %v959_v36, %v958_v35  ;;  %v554_v38 = vld [vmem:[%s4370_s27 + $0x10] sm:$0xff]  ;;  %v960_v39 = vld [vmem:[#allocation7 + $0x20] sm:$0xff]  ;;  %v961_v40 = vld [vmem:[#allocation7 + $0x28] sm:$0xff]  ;;  %s2990_s21 = sshll.u32 %s4204_s22, 4  ;;  %s545_s29 = scalar_lea.vmem [#allocation12], %s544_s16 }
  0x96   : > { %v3411_v41 = vpack.c.bf16 %v961_v40, %v960_v39  ;;  %v555_v42 = vld [vmem:[%s4370_s27 + $0x18] sm:$0xf]  ;;  %v962_v43 = vld [vmem:[#allocation7 + $0x30] sm:$0xff]  ;;  %v963_v44 = vld [vmem:[#allocation7 + $0x38] sm:$0xff]  ;;  %s2816_s20 = sshll.u32 %s545_s29, 4  ;;  %s5057_s26 = sld [smem:[#allocation27_spill]]  ;;  %s4954_s20 = int_to_ptr.vmem [resolvable:$true] %s2816_s20 }
  0x97   : > { %2928 = vmatmul.mubr.msk.f32.vlgmr.msra.gmra.mrb[0].mxu0 %vm564_vm3, %v552_v22  ;;  %3406 = vmatpush1.bf16.msra.mxu1 %v3405_v34  ;;  %v825_v45 = vld [vmem:[#allocation4 + $0x80] sm:$0xff]  ;;  %v827_v46 = vld [vmem:[#allocation4 + $0x90] sm:$0xff]  ;;  %v830_v47 = vld [vmem:[#allocation4 + $0xa8] sm:$0xff]  ;;  %v3414_v49 = vpack.c.bf16 %v963_v44, %v962_v43  ;;  %s2804_s12 = scalar_lea.sflag [#allocation6], %s544_s16  ;;  %s4014_s24 = scalar_lea.vmem %s4954_s20, 16 }
  0x98   : > { %654 = vmatprep.mubr.f32.mxu0 %v4098_v0  ;;  %3387 = vmatpush1.bf16.msra.mxu0 %v3386_v23  ;;  %v832_v48 = vld [vmem:[#allocation4 + $0xb8] sm:$0x3f]  ;;  %v692_v50 = vld [vmem:[%s4370_s27 + $0x1] sm:$0xff]  ;;  %v3396_v51 = vpack.c.bf16 %v827_v46, %v825_v45  ;;  %v964_v52 = vld [vmem:[#allocation7 + $0x40] sm:$0xff]  ;;  %p4015_p2 = scmp.ne.s32.totalorder %s4954_s20, %s4014_s24  ;;  %s4102_s22 = smov [#allocation12]  }
  0x99   : > { %3390 = vmatprep.subr.msk.bf16.mxu0 %vm4361_vm2, %v3388_v24  ;;  %3407 = vmatprep.subr.bf16.mxu1 %v4099_v1  ;;  %v965_v53 = vld [vmem:[#allocation7 + $0x48] sm:$0xff]  ;;  %v3398_v54 = vpack.c.bf16 %v832_v48, %v830_v47  ;;  %v829_v55 = vld [vmem:[#allocation4 + $0xa0] sm:$0xff]  ;;  %v831_v56 = vld [vmem:[#allocation4 + $0xb0] sm:$0x3f]  ;;  %s4018_s28 = sshll.u32 %s4102_s22, 4  ;;  %s4019_s28 = int_to_ptr.vmem [resolvable:$false] %s4018_s28 }
  0x9a   : > { %v3417_v57 = vpack.c.bf16 %v965_v53, %v964_v52  ;;  %v693_v58 = vld [vmem:[%s4370_s27 + $0x9] sm:$0xff]  ;;  %v3401_v59 = vpack.c.bf16 %v831_v56, %v829_v55  ;;  %v694_v63 = vld [vmem:[%s4370_s27 + $0x11] sm:$0xff]  ;;  %v969_v3 = vld [vmem:[#allocation7 + $0x68] sm:$0xff]  ;;  %p5058_p3 = scmp.ne.s32.totalorder %s5055_s23, 0  ;;  %s4020_s3 = scalar_lea.vmem %s4019_s28, 32 }
  0x9b   : > { %2929 = vmatmul.mubr.msk.f32.gmra.mrb[2].mxu0 %vm564_vm3, %v553_v29  ;;  %3409 = vmatpush1.bf16.msra.mxu1 %v3408_v37  ;;  %v966_v60 = vld [vmem:[#allocation7 + $0x50] sm:$0xff]  ;;  %v967_v61 = vld [vmem:[#allocation7 + $0x58] sm:$0xff]  ;;  %v968_v2 = vld [vmem:[#allocation7 + $0x60] sm:$0xff]  ;;  %p4021_p8 = scmp.lt.s32.totalorder %s4954_s20, %s4019_s28  ;;  %p4022_p11 = scmp.lt.s32.totalorder %s4020_s3, %s4014_s24 }
  0x9c   : > { %660 = vmatprep.mubr.f32.mxu0 %v4098_v0  ;;  %3393 = vmatpush1.bf16.msk.msra.mxu0 %vm4361_vm2, %v3391_v30  ;;  %v3420_v62 = vpack.c.bf16 %v967_v61, %v966_v60  ;;  %v3423_v4 = vpack.c.bf16 %v969_v3, %v968_v2  ;;  %v695_v5 = vld [vmem:[%s4370_s27 + $0x19] sm:$0xf]  ;;  %v970_v6 = vld [vmem:[#allocation7 + $0x70] sm:$0xff]  ;;  %v971_v7 = vld [vmem:[#allocation7 + $0x78] sm:$0xff]  ;;  %s4952_s14 = scalar_lea.hbm %s5057_s26, %s2990_s21  ;;  %p4016_p4 = pnand %p4015_p2, %p5058_p3 }
  0x9d   : > { %3395 = vmatprep.subr.bf16.mxu0 %v3394_v33  ;;  %3410 = vmatprep.subr.bf16.mxu1 %v4099_v1  ;;  %v1076_v8 = vld [vmem:[#allocation7 + $0xa8] sm:$0xff]  ;;  %v1077_v9 = vld [vmem:[#allocation7 + $0xb0] sm:$0xff]  ;;  %v3426_v10 = vpack.c.bf16 %v971_v7, %v970_v6  ;;  %v972_v13 = vld [vmem:[#allocation7 + $0x80] sm:$0xff]  ;;  %p4023_p5 = por %p4022_p11, %p4021_p8 }
  0x9e   : > { %v820_v11 = vld [vmem:[%s4370_s27 + $0x2] sm:$0xff]  ;;  %v3435_v12 = vpack.c.bf16 %v1077_v9, %v1076_v8  ;;  %v1078_v15 = vld [vmem:[#allocation7 + $0xb8] sm:$0xff]  ;;  %v1079_v16 = vld [vmem:[#allocation7 + $0xc0] sm:$0xff]  ;;  %p4017_p7 = pneg %p4016_p4 }
  0x9f   : > { %2930 = vmatmul.mubr.msk.f32.gmra.mrb[4].mxu0 %vm564_vm3, %v554_v38  ;;  %3412 = vmatpush1.bf16.msra.mxu1 %v3411_v41  ;;  %v973_v14 = vld [vmem:[#allocation7 + $0x88] sm:$0xff]  ;;  %v821_v18 = vld [vmem:[%s4370_s27 + $0xa] sm:$0xff]  ;;  %v3438_v19 = vpack.c.bf16 %v1079_v16, %v1078_v15  ;;  %v822_v22 = vld [vmem:[%s4370_s27 + $0x12] sm:$0xff] }
  0xa0   : > { %666 = vmatprep.mubr.f32.mxu0 %v4098_v0  ;;  %3413 = vmatprep.subr.bf16.mxu1 %v4099_v1  ;;  %v3429_v17 = vpack.c.bf16 %v973_v14, %v972_v13  ;;  %v1080_v20 = vld [vmem:[#allocation7 + $0xc8] sm:$0xff]  ;;  %v1081_v21 = vld [vmem:[#allocation7 + $0xd0] sm:$0xff]  ;;  %v1082_v24 = vld [vmem:[#allocation7 + $0xd8] sm:$0xff]  ;;  %p4024_p0 = pnand %p4023_p5, %p4017_p7 }
  0xa1   : > { %v3441_v23 = vpack.c.bf16 %v1081_v21, %v1080_v20  ;;  %v1083_v25 = vld [vmem:[#allocation7 + $0xe0] sm:$0xff]  ;;  %v1084_v28 = vld [vmem:[#allocation7 + $0xe8] sm:$0xff]  ;;  %v1085_v29 = vld [vmem:[#allocation7 + $0xf0] sm:$0xff] }
  0xa2   : > { %v823_v26 = vld [vmem:[%s4370_s27 + $0x1a] sm:$0xf]  ;;  %v3444_v27 = vpack.c.bf16 %v1083_v25, %v1082_v24  ;;  %v3447_v30 = vpack.c.bf16 %v1085_v29, %v1084_v28  ;;  %v1086_v31 = vld [vmem:[#allocation7 + $0xf8] sm:$0xff]  ;;  %v1088_v34 = vld [vmem:[#allocation7 + $0x108] sm:$0xff] }
  0xa3   : > { %2931 = vmatmul.mubr.msk.f32.gmra.mrb[6].mxu0 %vm564_vm3, %v555_v42  ;;  %3415 = vmatpush1.bf16.msra.mxu1 %v3414_v49  ;;  %v1087_v32 = vld [vmem:[#allocation7 + $0x100] sm:$0xff]  ;;  %v1089_v35 = vld [vmem:[#allocation7 + $0x110] sm:$0xff]  ;;  %v1090_v37 = vld [vmem:[#allocation7 + $0x118] sm:$0xff] }
  0xa4   : > { %787 = vmatprep.mubr.f32.mxu0 %v4098_v0  ;;  %3416 = vmatprep.subr.bf16.mxu1 %v4099_v1  ;;  %v3450_v33 = vpack.c.bf16 %v1087_v32, %v1086_v31  ;;  %v3453_v36 = vpack.c.bf16 %v1089_v35, %v1088_v34  ;;  %v1091_v38 = vld [vmem:[#allocation7 + $0x120] sm:$0xff]  ;;  %v1092_v40 = vld [vmem:[#allocation7 + $0x128] sm:$0xff]  ;;  %v1093_v41 = vld [vmem:[#allocation7 + $0x130] sm:$0xff] }
  0xa5   : > { %v3456_v39 = vpack.c.bf16 %v1091_v38, %v1090_v37  ;;  %v3459_v42 = vpack.c.bf16 %v1093_v41, %v1092_v40  ;;  %v974_v43 = vld [vmem:[#allocation7 + $0x90] sm:$0xff]  ;;  %v975_v44 = vld [vmem:[#allocation7 + $0x98] sm:$0xff]  ;;  %v1095_v47 = vld [vmem:[#allocation7 + $0x140] sm:$0xff] }
  0xa6   : > { %v1094_v45 = vld [vmem:[#allocation7 + $0x138] sm:$0xff]  ;;  %v3432_v46 = vpack.c.bf16 %v975_v44, %v974_v43  ;;  %v976_v49 = vld [vmem:[#allocation7 + $0xa0] sm:$0xff]  ;;  %v1186_v20 = vld [vmem:[%s4998_s4] sm:$0xff] }
  0xa7   : > { %2934 = vmatmul.mubr.msk.f32.vlgmr.msra.gmra.mrb[0].mxu0 %vm564_vm3, %v692_v50  ;;  %3418 = vmatpush1.bf16.msra.mxu1 %v3417_v57  ;;  %v3462_v48 = vpack.c.bf16 %v1095_v47, %v1094_v45  ;;  %v1096_v50 = vld [vmem:[#allocation7 + $0x148] sm:$0xff]  ;;  %vm4464_vm7 = vmpackc.low %vm1195_vm6, %vm4100_vm1  ;;  %v1187_v44 = vld [vmem:[%s4998_s4 + $0x8] sm:$0x3f] }
  0xa8   : > { %793 = vmatprep.mubr.f32.mxu0 %v4098_v0  ;;  %3397 = vmatpush1.bf16.msra.mxu0 %v3396_v51  ;;  %v674_v51 = vlaneseq  ;;  %v2955_v45 = vld [vmem:[%s4998_s4 + $0x10] sm:$0xff]  ;;  %v1370_v47 = vld [vmem:[#allocation9 + $0x18] sm:$0xff] }
  0xa9   : > { %3400 = vmatprep.subr.msk.bf16.mxu0 %vm4361_vm2, %v3398_v54  ;;  %3419 = vmatprep.subr.bf16.mxu1 %v4099_v1  ;;  %v551_v54 = vld [vmem:[%s4996_s2] sm:$0x3] }
  0xaa   : > { %v4439_v52 = vshrl.u32 %v674_v51, 7  ;;  %v2956_v51 = vld [vmem:[%s4998_s4 + $0x18] sm:$0x3f] }
  0xab   : > { %2935 = vmatmul.mubr.msk.f32.gmra.mrb[2].mxu0 %vm564_vm3, %v693_v58  ;;  %3421 = vmatpush1.bf16.msra.mxu1 %v3420_v62 }
  0xac   : > { %799 = vmatprep.mubr.f32.mxu0 %v4098_v0  ;;  %3403 = vmatpush1.bf16.msk.msra.mxu0 %vm4361_vm2, %v3401_v59  ;;  %v676_v53 = vsub.s32 0, %v4439_v52  ;;  %v680_v55 = vsub.s32 1, %v4439_v52 }
  0xad   : > { %3434 = vmatprep.subr.bf16.mxu0 %v4099_v1  ;;  %3422 = vmatprep.subr.bf16.mxu1 %v4099_v1 }
  0xae   : > { %v677_v56 = vrot.slane %v551_v54, %v676_v53  ;;  %v681_v57 = vrot.slane %v551_v54, %v680_v55 }
  0xaf   : > { %2936 = vmatmul.mubr.msk.f32.gmra.mrb[4].mxu0 %vm564_vm3, %v694_v63  ;;  %3424 = vmatpush1.bf16.msra.mxu1 %v3423_v4 }
  0xb0   : > { %805 = vmatprep.mubr.f32.mxu0 %v4098_v0  ;;  %3425 = vmatprep.subr.bf16.mxu1 %v4099_v1 }
  0xb3   : > { %2937 = vmatmul.mubr.msk.f32.gmra.mrb[6].mxu0 %vm564_vm3, %v695_v5  ;;  %3427 = vmatpush1.bf16.msra.mxu1 %v3426_v10 }
  0xb4   : > { %915 = vmatprep.mubr.f32.mxu0 %v4098_v0  ;;  %3428 = vmatprep.subr.bf16.mxu1 %v4099_v1 }
  0xb7   : > { %2940 = vmatmul.mubr.msk.f32.vlgmr.msra.gmra.mrb[0].mxu0 %vm564_vm3, %v820_v11  ;;  %3430 = vmatpush1.bf16.msra.mxu1 %v3429_v17 }
  0xb8   : > { %921 = vmatprep.mubr.f32.mxu0 %v4098_v0  ;;  %3436 = vmatpush1.bf16.msra.mxu0 %v3435_v12 }
  0xb9   : > { %3437 = vmatprep.subr.bf16.mxu0 %v4099_v1  ;;  %3431 = vmatprep.subr.bf16.mxu1 %v4099_v1 }
  0xbb   : > { %2941 = vmatmul.mubr.msk.f32.gmra.mrb[2].mxu0 %vm564_vm3, %v821_v18  ;;  %3433 = vmatpush1.bf16.msra.mxu1 %v3432_v46  ;;  %v1368_v46 = vld [vmem:[#allocation9 + $0x8] sm:$0xff] }
  0xbc   : > { %927 = vmatprep.mubr.f32.mxu0 %v4098_v0  ;;  %3439 = vmatpush1.bf16.msra.mxu0 %v3438_v19 }
  0xbd   : > { %3440 = vmatprep.subr.bf16.mxu0 %v4099_v1  ;;  %1030 = vmatprep.subr.mxu1 %v4098_v0 }
  0xbf   : > { %2942 = vmatmul.mubr.msk.f32.gmra.mrb[4].mxu0 %vm564_vm3, %v822_v22  ;;  %1031 = vmatpush1.msra.mxu1 %v976_v49  ;;  %v1367_v49 = vld [vmem:[#allocation9] sm:$0xff] }
  0xc0   : > { %933 = vmatprep.mubr.f32.mxu0 %v4098_v0  ;;  %3442 = vmatpush1.bf16.msra.mxu0 %v3441_v23 }
  0xc1   : > { %3443 = vmatprep.subr.bf16.mxu0 %v4099_v1 }
  0xc3   : > { %2943 = vmatmul.mubr.msk.f32.gmra.mrb[6].mxu0 %vm564_vm3, %v823_v26 }
  0xc4   : > { %3445 = vmatpush1.bf16.msra.mxu0 %v3444_v27 }
  0xc5   : > { %3446 = vmatprep.subr.bf16.mxu0 %v4099_v1 }
  0xc8   : > { %3448 = vmatpush1.bf16.msra.mxu0 %v3447_v30 }
  0xc9   : > { %3449 = vmatprep.subr.bf16.mxu0 %v4099_v1 }
  0xcc   : > { %3451 = vmatpush1.bf16.msra.mxu0 %v3450_v33 }
  0xcd   : > { %3452 = vmatprep.subr.bf16.mxu0 %v4099_v1 }
  0xd0   : > { %3454 = vmatpush1.bf16.msra.mxu0 %v3453_v36 }
  0xd1   : > { %3455 = vmatprep.subr.bf16.mxu0 %v4099_v1 }
  0xd4   : > { %3457 = vmatpush1.bf16.msra.mxu0 %v3456_v39 }
  0xd5   : > { %3458 = vmatprep.subr.bf16.mxu0 %v4099_v1 }
  0xd8   : > { %3460 = vmatpush1.bf16.msra.mxu0 %v3459_v42  ;;  %v2190_v42 = vld [vmem:[%s5003_s9 + $0x78] sm:$0xff] }
  0xd9   : > { %3461 = vmatprep.subr.bf16.mxu0 %v4099_v1 }
  0xdc   : > { %3463 = vmatpush1.bf16.msra.mxu0 %v3462_v48  ;;  %v3484_v48 = vpack.c.bf16 %v1370_v47, %v1368_v46  ;;  %v1748_v46 = vld [vmem:[#allocation10 + $0x78] sm:$0xff] }
  0xdd   : > { %1137 = vmatprep.subr.mxu0 %v4098_v0 }
  0xe0   : > { %1138 = vmatpush1.msra.mxu0 %v1096_v50  ;;  %v1369_v50 = vld [vmem:[#allocation9 + $0x10] sm:$0xff] }
  0xe1   : > { %3544 = vmatprep.subr.bf16.mxu0 %v4099_v1  ;;  %v3486_v54 = vpack.c.bf16 %v1369_v50, %v1367_v49  ;;  %v1750_v49 = vld [vmem:[#allocation10 + $0x88] sm:$0xff] }
 0x18a   : > { %v917_v58 = vpop.f32.mrb[0].mxu0 }
 0x18b   : > { %v3768_v59 = vadd.f32 %v917_v58, %v677_v56  ;;  %v919_v60 = vpop.f32.mrb[1].mxu0 }
 0x18c   : > { %v3769_v61 = vadd.f32 %v919_v60, %v681_v57  ;;  %v1373_v60 = vld [vmem:[#allocation9 + $0x30] sm:$0xff] }
 0x18d   : > { %v948_v2 = vmax.f32 %v3768_v59, 0.0  ;;  %v1371_v59 = vld [vmem:[#allocation9 + $0x20] sm:$0xff] }
 0x18e   : > { %v949_v62 = vmax.f32 %v3769_v61, 0.0  ;;  %v923_v63 = vpop.f32.mrb[2].mxu0  ;;  %v3490_v61 = vpack.c.bf16 %v1373_v60, %v1371_v59 }
 0x18f   : > { %v3770_v3 = vadd.f32 %v923_v63, %v677_v56  ;;  %v925_v4 = vpop.f32.mrb[3].mxu0  ;;  %v1378_v63 = vld [vmem:[#allocation9 + $0x58] sm:$0xff] }
 0x190   : > { %v3771_v5 = vadd.f32 %v925_v4, %v681_v57  ;;  %2944 = vmatprep.mubr.msk.f32.mxu1 %vm977_vm4, %v949_v62  ;;  %2948 = vmatprep.mubr.msk.f32.mxu0 %vm977_vm4, %v949_v62  ;;  %v1376_v62 = vld [vmem:[#allocation9 + $0x48] sm:$0xff]  ;;  %v1377_v4 = vld [vmem:[#allocation9 + $0x50] sm:$0xff] }
 0x191   : > { %1055 = vmatmul.mubr.f32.vlgmr.msra.gmra.mrb[0].mxu1 %v948_v2  ;;  %1162 = vmatmul.mubr.f32.vlgmr.msra.gmra.mrb[8].mxu0 %v948_v2  ;;  %v950_v8 = vmax.f32 %v3770_v3, 0.0  ;;  %v1375_v2 = vld [vmem:[#allocation9 + $0x40] sm:$0xff]  ;;  %v3492_v3 = vpack.c.bf16 %v1378_v63, %v1376_v62 }
 0x192   : > { %v951_v6 = vmax.f32 %v3771_v5, 0.0  ;;  %v929_v7 = vpop.f32.mrb[4].mxu0  ;;  %v3494_v5 = vpack.c.bf16 %v1377_v4, %v1375_v2  ;;  %v1496_v4 = vld [vmem:[#allocation9 + $0xb0] sm:$0xff] }
 0x193   : > { %v3772_v9 = vadd.f32 %v929_v7, %v677_v56  ;;  %v931_v10 = vpop.f32.mrb[5].mxu0  ;;  %v1382_v7 = vld [vmem:[#allocation9 + $0x78] sm:$0xff] }
 0x194   : > { %v3773_v11 = vadd.f32 %v931_v10, %v681_v57  ;;  %2945 = vmatprep.mubr.msk.f32.mxu1 %vm977_vm4, %v951_v6  ;;  %2949 = vmatprep.mubr.msk.f32.mxu0 %vm977_vm4, %v951_v6  ;;  %v1380_v6 = vld [vmem:[#allocation9 + $0x68] sm:$0xff]  ;;  %v1381_v10 = vld [vmem:[#allocation9 + $0x70] sm:$0xff] }
 0x195   : > { %1060 = vmatmul.mubr.f32.gmra.mrb[2].mxu1 %v950_v8  ;;  %1167 = vmatmul.mubr.f32.gmra.mrb[10].mxu0 %v950_v8  ;;  %v952_v14 = vmax.f32 %v3772_v9, 0.0  ;;  %v3496_v8 = vpack.c.bf16 %v1382_v7, %v1380_v6  ;;  %v1379_v9 = vld [vmem:[#allocation9 + $0x60] sm:$0xff]  ;;  %v1501_v6 = vld [vmem:[#allocation9 + $0xd8] sm:$0xff]  ;;  %v1503_v7 = vld [vmem:[#allocation9 + $0xe8] sm:$0xff] }
 0x196   : > { %v953_v12 = vmax.f32 %v3773_v11, 0.0  ;;  %v935_v13 = vpop.f32.mrb[6].mxu0  ;;  %v3498_v11 = vpack.c.bf16 %v1381_v10, %v1379_v9  ;;  %v3508_v9 = vpack.c.bf16 %v1503_v7, %v1501_v6  ;;  %v1500_v10 = vld [vmem:[#allocation9 + $0xd0] sm:$0xff]  ;;  %v1630_v6 = vld [vmem:[#allocation9 + $0x1e0] sm:$0xff] }
 0x197   : > { %v3774_v15 = vadd.f32 %v935_v13, %v677_v56  ;;  %v937_v16 = vpop.f32.mrb[7].mxu0  ;;  %v1372_v56 = vld [vmem:[#allocation9 + $0x28] sm:$0xff]  ;;  %v1386_v13 = vld [vmem:[#allocation9 + $0x98] sm:$0xff]  ;;  %v1632_v7 = vld [vmem:[#allocation9 + $0x1f0] sm:$0xff] }
 0x198   : > { %v3775_v17 = vadd.f32 %v937_v16, %v681_v57  ;;  %2946 = vmatprep.mubr.msk.f32.mxu1 %vm977_vm4, %v953_v12  ;;  %2950 = vmatprep.mubr.msk.f32.mxu0 %vm977_vm4, %v953_v12  ;;  %v1374_v57 = vld [vmem:[#allocation9 + $0x38] sm:$0xff]  ;;  %v1384_v12 = vld [vmem:[#allocation9 + $0x88] sm:$0xff]  ;;  %v1385_v16 = vld [vmem:[#allocation9 + $0x90] sm:$0xff] }
 0x199   : > { %1065 = vmatmul.mubr.f32.gmra.mrb[4].mxu1 %v952_v14  ;;  %1172 = vmatmul.mubr.f32.gmra.mrb[12].mxu0 %v952_v14  ;;  %v954_v19 = vmax.f32 %v3774_v15, 0.0  ;;  %v3488_v58 = vpack.c.bf16 %v1374_v57, %v1372_v56  ;;  %v3500_v14 = vpack.c.bf16 %v1386_v13, %v1384_v12  ;;  %v1383_v15 = vld [vmem:[#allocation9 + $0x80] sm:$0xff]  ;;  %v1753_v57 = vld [vmem:[#allocation10 + $0xa0] sm:$0xff]  ;;  %v1505_v13 = vld [vmem:[#allocation9 + $0xf8] sm:$0xff] }
 0x19a   : > { %v955_v18 = vmax.f32 %v3775_v17, 0.0  ;;  %v3502_v17 = vpack.c.bf16 %v1385_v16, %v1383_v15 }
 0x19c   : > { %2947 = vmatprep.mubr.msk.f32.mxu1 %vm977_vm4, %v955_v18  ;;  %2951 = vmatprep.mubr.msk.f32.mxu0 %vm977_vm4, %v955_v18  ;;  %v1388_v18 = vld [vmem:[#allocation9 + $0xa8] sm:$0xf] }
 0x19d   : > { %1070 = vmatmul.mubr.f32.gmra.mrb[6].mxu1 %v954_v19  ;;  %1177 = vmatmul.mubr.f32.gmra.mrb[14].mxu0 %v954_v19  ;;  %v1497_v19 = vld [vmem:[#allocation9 + $0xb8] sm:$0xff] }
 0x19e   : > { %3126 = vmatprep.mubr.msk.f32.mxu1 %vm1188_vm5, %v1186_v20  ;;  %v1499_v20 = vld [vmem:[#allocation9 + $0xc8] sm:$0xff] }
 0x264   : > { %v1056_v21 = vpop.f32.mrb[0].mxu1  ;;  %v1163_v22 = vpop.f32.mrb[8].mxu0 }
 0x265   : > { %v1182_v23 = vmax.f32 %v1056_v21, %v1163_v22  ;;  %v1058_v24 = vpop.f32.mrb[1].mxu1  ;;  %v1165_v25 = vpop.f32.mrb[9].mxu0  ;;  %v1387_v21 = vld [vmem:[#allocation9 + $0xa0] sm:$0xf]  ;;  %v3504_v22 = vpack.c.bf16 %v1499_v20, %v1497_v19  ;;  %v1509_v20 = vld [vmem:[#allocation9 + $0x118] sm:$0xff] }
 0x266   : > { %v1734_v24 = vld [vmem:[#allocation10 + $0x8] sm:$0xff]  ;;  %v1735_v25 = vld [vmem:[#allocation10 + $0x10] sm:$0xff] }
 0x268   : > { %v1061_v26 = vpop.f32.mrb[2].mxu1  ;;  %v1168_v27 = vpop.f32.mrb[10].mxu0 }
 0x269   : > { %v1183_v28 = vmax.f32 %v1061_v26, %v1168_v27  ;;  %v1063_v29 = vpop.f32.mrb[3].mxu1  ;;  %v1170_v30 = vpop.f32.mrb[11].mxu0  ;;  %v1736_v27 = vld [vmem:[#allocation10 + $0x18] sm:$0xff] }
 0x26a   : > { %v1737_v29 = vld [vmem:[#allocation10 + $0x20] sm:$0xff]  ;;  %v1738_v30 = vld [vmem:[#allocation10 + $0x28] sm:$0xff] }
 0x26b   : > { %v3464_v31 = vpack.c.bf16 %v1183_v28, %v1182_v23  ;;  %v1733_v23 = vld [vmem:[#allocation10] sm:$0xff]  ;;  %v3548_v28 = vpack.c.bf16 %v1736_v27, %v1735_v25  ;;  %v1510_v25 = vld [vmem:[#allocation9 + $0x120] sm:$0xff]  ;;  %v1515_v27 = vld [vmem:[#allocation9 + $0x148] sm:$0xff] }
 0x26c   : > { %v1066_v32 = vpop.f32.mrb[4].mxu1  ;;  %v1173_v33 = vpop.f32.mrb[12].mxu0  ;;  %v3545_v26 = vpack.c.bf16 %v1734_v24, %v1733_v23  ;;  %v1508_v24 = vld [vmem:[#allocation9 + $0x110] sm:$0xff] }
 0x26d   : > { %v1184_v34 = vmax.f32 %v1066_v32, %v1173_v33  ;;  %v1068_v35 = vpop.f32.mrb[5].mxu1  ;;  %v1175_v36 = vpop.f32.mrb[13].mxu0  ;;  %3465 = vmatprep.subr.bf16.mxu1 %v3464_v31  ;;  %v1739_v32 = vld [vmem:[#allocation10 + $0x30] sm:$0xff]  ;;  %v1740_v33 = vld [vmem:[#allocation10 + $0x38] sm:$0xff] }
 0x26e   : > { %3467 = vmatpush3.bf16.msra.mxu1 %v3464_v31  ;;  %3546 = vmatpush1.bf16.msra.mxu0 %v3545_v26  ;;  %v1741_v35 = vld [vmem:[#allocation10 + $0x40] sm:$0xff]  ;;  %v1742_v36 = vld [vmem:[#allocation10 + $0x48] sm:$0xff] }
 0x26f   : > { %3547 = vmatprep.subr.bf16.mxu0 %v4099_v1  ;;  %v1513_v26 = vld [vmem:[#allocation9 + $0x138] sm:$0xff] }
 0x270   : > { %v1071_v37 = vpop.f32.mrb[6].mxu1  ;;  %v1178_v38 = vpop.f32.mrb[14].mxu0 }
 0x271   : > { %v1185_v39 = vmax.f32 %v1071_v37, %v1178_v38  ;;  %v1073_v40 = vpop.f32.mrb[7].mxu1  ;;  %v1180_v41 = vpop.f32.mrb[15].mxu0  ;;  %v3557_v37 = vpack.c.bf16 %v1742_v36, %v1741_v35  ;;  %v1743_v38 = vld [vmem:[#allocation10 + $0x50] sm:$0xff]  ;;  %v1617_v35 = vld [vmem:[#allocation9 + $0x178] sm:$0xff] }
 0x272   : > { %3549 = vmatpush1.bf16.msra.mxu0 %v3548_v28  ;;  %v1745_v41 = vld [vmem:[#allocation10 + $0x60] sm:$0xff]  ;;  %v3518_v28 = vpack.c.bf16 %v1510_v25, %v1508_v24  ;;  %v1614_v36 = vld [vmem:[#allocation9 + $0x160] sm:$0xff] }
 0x273   : > { %v3468_v43 = vpack.c.bf16 %v1185_v39, %v1184_v34  ;;  %3550 = vmatprep.subr.bf16.mxu0 %v4099_v1  ;;  %v3554_v34 = vpack.c.bf16 %v1740_v33, %v1739_v32  ;;  %v1744_v39 = vld [vmem:[#allocation10 + $0x58] sm:$0xff]  ;;  %v1517_v33 = vld [vmem:[#allocation9 + $0x158] sm:$0xf] }
 0x274   : > { %v3560_v40 = vpack.c.bf16 %v1744_v39, %v1743_v38  ;;  %v1619_v38 = vld [vmem:[#allocation9 + $0x188] sm:$0xff]  ;;  %v1621_v39 = vld [vmem:[#allocation9 + $0x198] sm:$0xff] }
 0x275   : > { %3470 = vmatprep.subr.msk.bf16.mxu1 %vm4464_vm7, %v3468_v43 }
 0x276   : > { %3473 = vmatpush3.bf16.msk.msra.mxu1 %vm4464_vm7, %v3468_v43 }
 0x277   : > { %3475 = vmatprep.subr.bf16.mxu1 %v3464_v31 }
 0x279   : > { %3127 = vmatmul.mubr.msk.f32.vlgmr.msra.gmra.mrb[8].mxu1 %vm1188_vm5, %v1187_v44 }
 0x27a   : > { %3477 = vmatpush3.bf16.msra.mxu1 %v3464_v31  ;;  %3137 = vmatprep.mubr.msk.f32.mxu1 %vm1188_vm5, %v2955_v45  ;;  %v3551_v31 = vpack.c.bf16 %v1738_v30, %v1737_v29  ;;  %v1747_v45 = vld [vmem:[#allocation10 + $0x70] sm:$0xff]  ;;  %v3520_v29 = vpack.c.bf16 %v1515_v27, %v1513_v26  ;;  %v1512_v30 = vld [vmem:[#allocation9 + $0x130] sm:$0xff] }
 0x27b   : > { %3480 = vmatprep.subr.msk.bf16.mxu1 %vm4464_vm7, %v3468_v43  ;;  %v3566_v47 = vpack.c.bf16 %v1748_v46, %v1747_v45  ;;  %v1618_v45 = vld [vmem:[#allocation9 + $0x180] sm:$0xff]  ;;  %v1620_v46 = vld [vmem:[#allocation9 + $0x190] sm:$0xff] }
 0x27c   : > { %3552 = vmatpush1.bf16.msra.mxu0 %v3551_v31  ;;  %v1514_v31 = vld [vmem:[#allocation9 + $0x140] sm:$0xff] }
 0x27d   : > { %3553 = vmatprep.subr.bf16.mxu0 %v4099_v1  ;;  %v3522_v32 = vpack.c.bf16 %v1514_v31, %v1512_v30  ;;  %v1843_v31 = vld [vmem:[#allocation10 + $0xd8] sm:$0xff] }
 0x27e   : > { %3483 = vmatpush3.bf16.msk.msra.mxu1 %vm4464_vm7, %v3468_v43  ;;  %v1746_v43 = vld [vmem:[#allocation10 + $0x68] sm:$0xff] }
 0x27f   : > { %3485 = vmatprep.subr.bf16.mxu1 %v3484_v48  ;;  %v3563_v44 = vpack.c.bf16 %v1746_v43, %v1745_v41  ;;  %v1749_v48 = vld [vmem:[#allocation10 + $0x80] sm:$0xff] }
 0x280   : > { %3555 = vmatpush1.bf16.msra.mxu0 %v3554_v34  ;;  %v3569_v50 = vpack.c.bf16 %v1750_v49, %v1749_v48  ;;  %v1615_v34 = vld [vmem:[#allocation9 + $0x168] sm:$0xff]  ;;  %v1625_v49 = vld [vmem:[#allocation9 + $0x1b8] sm:$0xff] }
 0x281   : > { %3138 = vmatmul.mubr.msk.f32.vlgmr.msra.gmra.mrb[10].mxu1 %vm1188_vm5, %v2956_v51  ;;  %3556 = vmatprep.subr.bf16.mxu0 %v4099_v1  ;;  %v1751_v51 = vld [vmem:[#allocation10 + $0x90] sm:$0xff]  ;;  %v3524_v41 = vpack.c.bf16 %v1617_v35, %v1615_v34  ;;  %v1623_v48 = vld [vmem:[#allocation9 + $0x1a8] sm:$0xff]  ;;  %v1844_v34 = vld [vmem:[#allocation10 + $0xe0] sm:$0xff] }
 0x282   : > { %3487 = vmatpush1.bf16.msra.mxu1 %v3486_v54  ;;  %1465 = vmatprep.mubr.f32.mxu1 %v4098_v0  ;;  %v1752_v54 = vld [vmem:[#allocation10 + $0x98] sm:$0xff]  ;;  %v1845_v35 = vld [vmem:[#allocation10 + $0xe8] sm:$0xff] }
 0x283   : > { %3489 = vmatprep.subr.bf16.mxu1 %v3488_v58  ;;  %v3572_v56 = vpack.c.bf16 %v1752_v54, %v1751_v51  ;;  %v1754_v58 = vld [vmem:[#allocation10 + $0xa8] sm:$0xff]  ;;  %v3532_v51 = vpack.c.bf16 %v1625_v49, %v1623_v48  ;;  %v1622_v54 = vld [vmem:[#allocation9 + $0x1a0] sm:$0xff] }
 0x284   : > { %3558 = vmatpush1.bf16.msra.mxu0 %v3557_v37  ;;  %v3575_v59 = vpack.c.bf16 %v1754_v58, %v1753_v57  ;;  %v1616_v37 = vld [vmem:[#allocation9 + $0x170] sm:$0xff]  ;;  %v1627_v58 = vld [vmem:[#allocation9 + $0x1c8] sm:$0xff]  ;;  %v1853_v48 = vld [vmem:[#allocation10 + $0x128] sm:$0xff] }
 0x285   : > { %3559 = vmatprep.subr.bf16.mxu0 %v4099_v1  ;;  %v3526_v43 = vpack.c.bf16 %v1616_v37, %v1614_v36  ;;  %v3587_v36 = vpack.c.bf16 %v1845_v35, %v1844_v34  ;;  %v1846_v37 = vld [vmem:[#allocation10 + $0xf0] sm:$0xff] }
 0x286   : > { %3491 = vmatpush1.bf16.msra.mxu1 %v3490_v61  ;;  %v2104_v34 = vld [vmem:[%s5003_s9 + $0x28] sm:$0xff] }
 0x287   : > { %3493 = vmatprep.subr.bf16.mxu1 %v3492_v3 }
 0x288   : > { %3561 = vmatpush1.bf16.msra.mxu0 %v3560_v40  ;;  %v1516_v40 = vld [vmem:[#allocation9 + $0x150] sm:$0xf] }
 0x289   : > { %3562 = vmatprep.subr.bf16.mxu0 %v4099_v1 }
 0x28a   : > { %3495 = vmatpush1.bf16.msra.mxu1 %v3494_v5  ;;  %v1498_v5 = vld [vmem:[#allocation9 + $0xc0] sm:$0xff] }
 0x28b   : > { %3497 = vmatprep.subr.bf16.mxu1 %v3496_v8  ;;  %v3506_v8 = vpack.c.bf16 %v1498_v5, %v1496_v4 }
 0x28c   : > { %3564 = vmatpush1.bf16.msra.mxu0 %v3563_v44  ;;  %v3528_v44 = vpack.c.bf16 %v1621_v39, %v1619_v38  ;;  %v1847_v38 = vld [vmem:[#allocation10 + $0xf8] sm:$0xff] }
 0x28d   : > { %3565 = vmatprep.subr.bf16.mxu0 %v4099_v1  ;;  %v3590_v39 = vpack.c.bf16 %v1847_v38, %v1846_v37  ;;  %v2106_v37 = vld [vmem:[%s5003_s9 + $0x38] sm:$0xff] }
 0x28e   : > { %3499 = vmatpush1.bf16.msra.mxu1 %v3498_v11  ;;  %v1502_v11 = vld [vmem:[#allocation9 + $0xe0] sm:$0xff] }
 0x28f   : > { %3501 = vmatprep.subr.bf16.mxu1 %v3500_v14  ;;  %v1507_v14 = vld [vmem:[#allocation9 + $0x108] sm:$0xff]  ;;  %v3510_v15 = vpack.c.bf16 %v1502_v11, %v1500_v10  ;;  %v1634_v10 = vld [vmem:[#allocation9 + $0x200] sm:$0xf] }
 0x290   : > { %3567 = vmatpush1.bf16.msra.mxu0 %v3566_v47  ;;  %v3512_v16 = vpack.c.bf16 %v1507_v14, %v1505_v13  ;;  %v1755_v13 = vld [vmem:[#allocation10 + $0xb0] sm:$0xff]  ;;  %v1756_v14 = vld [vmem:[#allocation10 + $0xb8] sm:$0xff] }
 0x291   : > { %3568 = vmatprep.subr.bf16.mxu0 %v4099_v1 }
 0x292   : > { %3503 = vmatpush1.bf16.msra.mxu1 %v3502_v17  ;;  %v1504_v17 = vld [vmem:[#allocation9 + $0xf0] sm:$0xff] }
 0x293   : > { %2960 = vmatprep.subr.msk.mxu1 %vm1195_vm6, %v1388_v18  ;;  %v1506_v18 = vld [vmem:[#allocation9 + $0x100] sm:$0xff] }
 0x294   : > { %3570 = vmatpush1.bf16.msra.mxu0 %v3569_v50  ;;  %v3530_v50 = vpack.c.bf16 %v1620_v46, %v1618_v45  ;;  %v1851_v45 = vld [vmem:[#allocation10 + $0x118] sm:$0xff] }
 0x295   : > { %3571 = vmatprep.subr.bf16.mxu0 %v4099_v1 }
 0x296   : > { %2961 = vmatpush1.msk.msra.mxu1 %vm1195_vm6, %v1387_v21  ;;  %v1511_v21 = vld [vmem:[#allocation9 + $0x128] sm:$0xff] }
 0x297   : > { %3505 = vmatprep.subr.bf16.mxu1 %v3504_v22  ;;  %v3514_v22 = vpack.c.bf16 %v1506_v18, %v1504_v17  ;;  %v3516_v23 = vpack.c.bf16 %v1511_v21, %v1509_v20 }
 0x298   : > { %3573 = vmatpush1.bf16.msra.mxu0 %v3572_v56  ;;  %v1624_v56 = vld [vmem:[#allocation9 + $0x1b0] sm:$0xff] }
 0x299   : > { %3574 = vmatprep.subr.bf16.mxu0 %v4099_v1 }
 0x29c   : > { %3576 = vmatpush1.bf16.msra.mxu0 %v3575_v59  ;;  %v1629_v59 = vld [vmem:[#allocation9 + $0x1d8] sm:$0xff] }
 0x29d   : > { %3577 = vmatprep.subr.bf16.mxu0 %v4099_v1 }
 0x34c   : > { %v3128_v60 = vpop.f32.mrb[8].mxu1 }
 0x34d   : > { %v1265_v61 = vpop.f32.mrb[9].mxu1 }
 0x354   : > { %v3139_v62 = vpop.f32.mrb[10].mxu1 }
 0x355   : > { %v1359_v63 = vmax.f32 %v3128_v60, %v3139_v62  ;;  %v1349_v2 = vpop.f32.mrb[11].mxu1  ;;  %v3534_v60 = vpack.c.bf16 %v1624_v56, %v1622_v54  ;;  %v1626_v62 = vld [vmem:[#allocation9 + $0x1c0] sm:$0xff]  ;;  %v1856_v56 = vld [vmem:[#allocation10 + $0x140] sm:$0xff] }
 0x356   : > { %v1358_v3 = vmax.f32 %v1265_v61, %v1349_v2  ;;  %v3536_v61 = vpack.c.bf16 %v1629_v59, %v1627_v58  ;;  %v1631_v2 = vld [vmem:[#allocation9 + $0x1e8] sm:$0xff]  ;;  %v1858_v59 = vld [vmem:[#allocation10 + $0x150] sm:$0xff] }
 0x357   : > { %1363 = vst.msk [vmem:[#allocation2 + $0x8] sm:$0x3f] %vm1362_vm8, %v1359_v63  ;;  %v1628_v63 = vld [vmem:[#allocation9 + $0x1d0] sm:$0xff] }
 0x358   : > { %1361 = vst.msk [vmem:[#allocation2] sm:$0xff] %vm1360_vm9, %v1358_v3  ;;  %v1633_v3 = vld [vmem:[#allocation9 + $0x1f8] sm:$0xff]  ;;  %v3538_v4 = vpack.c.bf16 %v1628_v63, %v1626_v62  ;;  %v1860_v62 = vld [vmem:[#allocation10 + $0x160] sm:$0xff] }
 0x359   : > { %v3540_v5 = vpack.c.bf16 %v1633_v3, %v1631_v2  ;;  %v1861_v63 = vld [vmem:[#allocation10 + $0x168] sm:$0xff]  ;;  %v1862_v3 = vld [vmem:[#allocation10 + $0x170] sm:$0xff] }
 0x35a   : > { %v3611_v2 = vpack.c.bf16 %v1861_v63, %v1860_v62  ;;  %v2276_v63 = vld [vmem:[%s5003_s9 + $0xd0] sm:$0xff] }
 0x35e   : > { %v1366_v19 = vld [vmem:[#allocation2 + $0x8] sm:$0xf] }
 0x35f   : > { %v1365_v12 = vld [vmem:[#allocation2] sm:$0xff]  ;;  %v1494_v57 = vld [vmem:[#allocation2 + $0x9] sm:$0xf] }
 0x360   : > { %2962 = vmatmul.mubr.msk.f32.vlgmr.msra.gmra.mrb[12].mxu1 %vm1360_vm9, %v1365_v12  ;;  %v1493_v47 = vld [vmem:[#allocation2 + $0x1] sm:$0xff]  ;;  %v1612_v12 = vld [vmem:[#allocation2 + $0xa] sm:$0xf] }
 0x361   : > { %3507 = vmatpush1.bf16.msra.mxu1 %v3506_v8  ;;  %1471 = vmatprep.mubr.f32.mxu1 %v4098_v0  ;;  %v3542_v8 = vpack.c.bf16 %v1632_v7, %v1630_v6  ;;  %v1611_v11 = vld [vmem:[#allocation2 + $0x2] sm:$0xff] }
 0x362   : > { %3509 = vmatprep.subr.bf16.mxu1 %v3508_v9  ;;  %v1635_v9 = vld [vmem:[#allocation9 + $0x208] sm:$0xf] }
 0x364   : > { %2963 = vmatmul.mubr.msk.f32.gmra.mrb[14].mxu1 %vm1360_vm9, %v1366_v19 }
 0x365   : > { %3511 = vmatpush1.bf16.msra.mxu1 %v3510_v15  ;;  %1594 = vmatprep.mubr.f32.mxu1 %v4098_v0  ;;  %v3578_v15 = vpack.c.bf16 %v1756_v14, %v1755_v13 }
 0x366   : > { %3513 = vmatprep.subr.bf16.mxu1 %v3512_v16  ;;  %v1364_v16 = vld [vmem:[%s5000_s6] sm:$0x3] }
 0x367   : > { %3579 = vmatpush1.bf16.msra.mxu0 %v3578_v15  ;;  %v1482_v17 = vrot.slane %v1364_v16, %v676_v53  ;;  %v1486_v18 = vrot.slane %v1364_v16, %v680_v55  ;;  %v1842_v53 = vld [vmem:[#allocation10 + $0xd0] sm:$0xff]  ;;  %v2187_v16 = vld [vmem:[%s5003_s9 + $0x60] sm:$0xff] }
 0x368   : > { %3580 = vmatprep.subr.bf16.mxu0 %v4099_v1 }
 0x369   : > { %3515 = vmatpush1.bf16.msra.mxu1 %v3514_v22  ;;  %v1840_v22 = vld [vmem:[#allocation10 + $0xc0] sm:$0xff] }
 0x36a   : > { %3517 = vmatprep.subr.bf16.mxu1 %v3516_v23  ;;  %v1841_v23 = vld [vmem:[#allocation10 + $0xc8] sm:$0xff] }
 0x36b   : > { %v3581_v27 = vpack.c.bf16 %v1841_v23, %v1840_v22  ;;  %v2978_v22 = vld [vmem:[%s5002_s8 + $0x8] sm:$0x3f] }
 0x36d   : > { %3519 = vmatpush1.bf16.msra.mxu1 %v3518_v28 }
 0x36e   : > { %3521 = vmatprep.subr.bf16.mxu1 %v3520_v29 }
 0x371   : > { %3523 = vmatpush1.bf16.msra.mxu1 %v3522_v32  ;;  %v3584_v32 = vpack.c.bf16 %v1843_v31, %v1842_v53  ;;  %v2192_v53 = vld [vmem:[%s5003_s9 + $0x88] sm:$0xff] }
 0x372   : > { %2964 = vmatprep.subr.msk.mxu1 %vm1195_vm6, %v1517_v33 }
 0x375   : > { %2965 = vmatpush1.msk.msra.mxu1 %vm1195_vm6, %v1516_v40  ;;  %v1848_v40 = vld [vmem:[#allocation10 + $0x100] sm:$0xff] }
 0x376   : > { %2966 = vmatmul.mubr.msk.f32.vlgmr.msra.gmra.mrb[12].mxu1 %vm1360_vm9, %v1493_v47  ;;  %3525 = vmatprep.subr.bf16.mxu1 %v3524_v41  ;;  %v1849_v41 = vld [vmem:[#allocation10 + $0x108] sm:$0xff]  ;;  %v1852_v47 = vld [vmem:[#allocation10 + $0x120] sm:$0xff] }
 0x377   : > { %3527 = vmatpush1.bf16.msra.mxu1 %v3526_v43  ;;  %1600 = vmatprep.mubr.f32.mxu1 %v4098_v0  ;;  %v3593_v43 = vpack.c.bf16 %v1849_v41, %v1848_v40  ;;  %v3599_v49 = vpack.c.bf16 %v1853_v48, %v1852_v47  ;;  %v2196_v40 = vld [vmem:[%s5003_s9 + $0xa8] sm:$0xff]  ;;  %v2198_v47 = vld [vmem:[%s5003_s9 + $0xb8] sm:$0xff] }
 0x378   : > { %3529 = vmatprep.subr.bf16.mxu1 %v3528_v44  ;;  %v1850_v44 = vld [vmem:[#allocation10 + $0x110] sm:$0xff] }
 0x379   : > { %v3596_v46 = vpack.c.bf16 %v1851_v45, %v1850_v44  ;;  %v2108_v44 = vld [vmem:[%s5003_s9 + $0x48] sm:$0xff] }
 0x37a   : > { %2967 = vmatmul.mubr.msk.f32.gmra.mrb[14].mxu1 %vm1360_vm9, %v1494_v57  ;;  %v1857_v57 = vld [vmem:[#allocation10 + $0x148] sm:$0xff] }
 0x37b   : > { %3531 = vmatpush1.bf16.msra.mxu1 %v3530_v50  ;;  %1712 = vmatprep.mubr.f32.mxu1 %v4098_v0  ;;  %v1854_v50 = vld [vmem:[#allocation10 + $0x130] sm:$0xff]  ;;  %v3605_v58 = vpack.c.bf16 %v1857_v57, %v1856_v56 }
 0x37c   : > { %3533 = vmatprep.subr.bf16.mxu1 %v3532_v51  ;;  %v1855_v51 = vld [vmem:[#allocation10 + $0x138] sm:$0xff] }
 0x37d   : > { %v3602_v54 = vpack.c.bf16 %v1855_v51, %v1854_v50  ;;  %v2110_v50 = vld [vmem:[%s5003_s9 + $0x58] sm:$0xff] }
 0x37f   : > { %3535 = vmatpush1.bf16.msra.mxu1 %v3534_v60  ;;  %v1859_v60 = vld [vmem:[#allocation10 + $0x158] sm:$0xff] }
 0x380   : > { %3537 = vmatprep.subr.bf16.mxu1 %v3536_v61  ;;  %v3608_v61 = vpack.c.bf16 %v1859_v60, %v1858_v59  ;;  %v2274_v60 = vld [vmem:[%s5003_s9 + $0xc0] sm:$0xff] }
 0x383   : > { %3539 = vmatpush1.bf16.msra.mxu1 %v3538_v4  ;;  %v1863_v4 = vld [vmem:[#allocation10 + $0x178] sm:$0xff] }
 0x384   : > { %3541 = vmatprep.subr.bf16.mxu1 %v3540_v5  ;;  %v3614_v5 = vpack.c.bf16 %v1863_v4, %v1862_v3 }
 0x387   : > { %3543 = vmatpush1.bf16.msra.mxu1 %v3542_v8 }
 0x388   : > { %2968 = vmatprep.subr.msk.mxu1 %vm1195_vm6, %v1635_v9 }
 0x38b   : > { %2969 = vmatpush1.msk.msra.mxu1 %vm1195_vm6, %v1634_v10 }
 0x38c   : > { %2970 = vmatmul.mubr.msk.f32.vlgmr.msra.gmra.mrb[12].mxu1 %vm1360_vm9, %v1611_v11  ;;  %3620 = vmatprep.subr.bf16.mxu1 %v4099_v1 }
 0x38d   : > { %1718 = vmatprep.mubr.f32.mxu1 %v4098_v0 }
 0x390   : > { %2971 = vmatmul.mubr.msk.f32.gmra.mrb[14].mxu1 %vm1360_vm9, %v1612_v12 }
 0x391   : > { %3151 = vmatprep.mubr.msk.f32.mxu1 %vm4101_vm11, %v4098_v0 }
 0x45f   : > { %v1714_v19 = vpop.f32.mrb[12].mxu1 }
 0x460   : > { %v4527_v20 = vadd.f32 %v1714_v19, %v1482_v17  ;;  %v1716_v21 = vpop.f32.mrb[13].mxu1  ;;  %v2100_v19 = vld [vmem:[%s5003_s9 + $0x8] sm:$0xff] }
 0x461   : > { %v3777_v24 = vadd.f32 %v1716_v21, %v1486_v18  ;;  %v1941_v21 = vld [vmem:[%s5002_s8] sm:$0x3f] }
 0x462   : > { %v1729_v28 = vmax.f32 %v4527_v20, 0.0 }
 0x463   : > { %v1730_v25 = vmax.f32 %v3777_v24, 0.0  ;;  %v1720_v26 = vpop.f32.mrb[14].mxu1  ;;  %v2189_v24 = vld [vmem:[%s5003_s9 + $0x70] sm:$0xff] }
 0x464   : > { %v4530_v29 = vadd.f32 %v1720_v26, %v1482_v17  ;;  %v1722_v30 = vpop.f32.mrb[15].mxu1  ;;  %v2188_v17 = vld [vmem:[%s5003_s9 + $0x68] sm:$0xff]  ;;  %v2101_v26 = vld [vmem:[%s5003_s9 + $0x10] sm:$0xff] }
 0x465   : > { %v4532_v52 = vadd.f32 %v1722_v30, %v1486_v18  ;;  %2972 = vmatprep.mubr.msk.f32.mxu0 %vm1757_vm10, %v1730_v25  ;;  %v2099_v18 = vld [vmem:[%s5003_s9] sm:$0xff]  ;;  %v3643_v23 = vpack.c.bf16 %v2188_v17, %v2187_v16  ;;  %v2285_v16 = vld [vmem:[%s5003_s9 + $0x118] sm:$0xff] }
 0x466   : > { %1829 = vmatmul.mubr.f32.vlgmr.msra.gmra.mrb[16].mxu0 %v1729_v28  ;;  %v1731_v33 = vmax.f32 %v4530_v29, 0.0  ;;  %v2191_v30 = vld [vmem:[%s5003_s9 + $0x80] sm:$0xff] }
 0x467   : > { %v1732_v55 = vmax.f32 %v4532_v52, 0.0  ;;  %3582 = vmatpush1.bf16.msra.mxu0 %v3581_v27  ;;  %v2102_v27 = vld [vmem:[%s5003_s9 + $0x18] sm:$0xff]  ;;  %v3649_v31 = vpack.c.bf16 %v2192_v53, %v2191_v30  ;;  %v2193_v52 = vld [vmem:[%s5003_s9 + $0x90] sm:$0xff]  ;;  %v2369_v30 = vld [vmem:[%s5003_s9 + $0x160] sm:$0xff] }
 0x468   : > { %3583 = vmatprep.subr.bf16.mxu0 %v4099_v1  ;;  %v3628_v29 = vpack.c.bf16 %v2102_v27, %v2101_v26  ;;  %v2367_v27 = vld [vmem:[%s5003_s9 + $0x150] sm:$0xff]  ;;  %v2370_v53 = vld [vmem:[%s5003_s9 + $0x168] sm:$0xff] }
 0x469   : > { %2973 = vmatprep.mubr.msk.f32.mxu0 %vm1757_vm10, %v1732_v55 }
 0x46a   : > { %1834 = vmatmul.mubr.f32.gmra.mrb[18].mxu0 %v1731_v33 }
 0x46b   : > { %3585 = vmatpush1.bf16.msra.mxu0 %v3584_v32  ;;  %2974 = vmatprep.mubr.msk.f32.mxu0 %vm1757_vm10, %v1730_v25  ;;  %v3625_v25 = vpack.c.bf16 %v2100_v19, %v2099_v18  ;;  %v2361_v18 = vld [vmem:[%s5003_s9 + $0x120] sm:$0xff]  ;;  %v2362_v19 = vld [vmem:[%s5003_s9 + $0x128] sm:$0xff] }
 0x46c   : > { %3586 = vmatprep.subr.bf16.mxu0 %v4099_v1 }
 0x46f   : > { %3588 = vmatpush1.bf16.msra.mxu0 %v3587_v36  ;;  %v2105_v36 = vld [vmem:[%s5003_s9 + $0x30] sm:$0xff] }
 0x470   : > { %3589 = vmatprep.subr.bf16.mxu0 %v4099_v1  ;;  %v3634_v38 = vpack.c.bf16 %v2106_v37, %v2105_v36  ;;  %v2450_v36 = vld [vmem:[%s5003_s9 + $0x190] sm:$0xff]  ;;  %v2451_v37 = vld [vmem:[%s5003_s9 + $0x198] sm:$0xff] }
 0x473   : > { %3591 = vmatpush1.bf16.msra.mxu0 %v3590_v39  ;;  %v2195_v39 = vld [vmem:[%s5003_s9 + $0xa0] sm:$0xff] }
 0x474   : > { %3592 = vmatprep.subr.bf16.mxu0 %v4099_v1  ;;  %v3655_v41 = vpack.c.bf16 %v2196_v40, %v2195_v39  ;;  %v3700_v39 = vpack.c.bf16 %v2451_v37, %v2450_v36  ;;  %v2452_v40 = vld [vmem:[%s5003_s9 + $0x1a0] sm:$0xff]  ;;  %v2714_v37 = vld [vmem:[%s5007_s13 + $0x8] sm:$0xff] }
 0x475   : > { %v2713_v36 = vld [vmem:[%s5007_s13] sm:$0xff] }
 0x477   : > { %3594 = vmatpush1.bf16.msra.mxu0 %v3593_v43  ;;  %v2107_v43 = vld [vmem:[%s5003_s9 + $0x40] sm:$0xff] }
 0x478   : > { %3595 = vmatprep.subr.bf16.mxu0 %v4099_v1  ;;  %v3637_v45 = vpack.c.bf16 %v2108_v44, %v2107_v43  ;;  %v2454_v44 = vld [vmem:[%s5003_s9 + $0x1b0] sm:$0xff] }
 0x47b   : > { %3597 = vmatpush1.bf16.msra.mxu0 %v3596_v46  ;;  %v2197_v46 = vld [vmem:[%s5003_s9 + $0xb0] sm:$0xff] }
 0x47c   : > { %3598 = vmatprep.subr.bf16.mxu0 %v4099_v1  ;;  %v3658_v48 = vpack.c.bf16 %v2198_v47, %v2197_v46  ;;  %v2456_v47 = vld [vmem:[%s5003_s9 + $0x1c0] sm:$0xff] }
 0x47f   : > { %3600 = vmatpush1.bf16.msra.mxu0 %v3599_v49  ;;  %v2109_v49 = vld [vmem:[%s5003_s9 + $0x50] sm:$0xff] }
 0x480   : > { %3601 = vmatprep.subr.bf16.mxu0 %v4099_v1  ;;  %v3640_v51 = vpack.c.bf16 %v2110_v50, %v2109_v49  ;;  %v2458_v50 = vld [vmem:[%s5003_s9 + $0x1d0] sm:$0xff] }
 0x483   : > { %3603 = vmatpush1.bf16.msra.mxu0 %v3602_v54 }
 0x484   : > { %3604 = vmatprep.subr.bf16.mxu0 %v4099_v1 }
 0x487   : > { %3606 = vmatpush1.bf16.msra.mxu0 %v3605_v58 }
 0x488   : > { %3607 = vmatprep.subr.bf16.mxu0 %v4099_v1 }
 0x48b   : > { %3609 = vmatpush1.bf16.msra.mxu0 %v3608_v61  ;;  %v2275_v61 = vld [vmem:[%s5003_s9 + $0xc8] sm:$0xff] }
 0x48c   : > { %3610 = vmatprep.subr.bf16.mxu0 %v4099_v1  ;;  %v3661_v62 = vpack.c.bf16 %v2275_v61, %v2274_v60  ;;  %v2538_v60 = vld [vmem:[%s5003_s9 + $0x1f8] sm:$0xff] }
 0x48f   : > { %3612 = vmatpush1.bf16.msra.mxu0 %v3611_v2  ;;  %v2277_v2 = vld [vmem:[%s5003_s9 + $0xd8] sm:$0xff] }
 0x490   : > { %3613 = vmatprep.subr.bf16.mxu0 %v4099_v1 }
 0x493   : > { %3615 = vmatpush1.bf16.msra.mxu0 %v3614_v5  ;;  %v3664_v5 = vpack.c.bf16 %v2277_v2, %v2276_v63  ;;  %v2539_v63 = vld [vmem:[%s5003_s9 + $0x200] sm:$0xff]  ;;  %v2540_v2 = vld [vmem:[%s5003_s9 + $0x208] sm:$0xff] }
 0x494   : > { %3616 = vmatprep.subr.bf16.mxu0 %v4099_v1 }
 0x496   : > { %1929 = vmatmul.mubr.f32.vlgmr.msra.gmra.mrb[20].mxu0 %v1729_v28  ;;  %v3646_v28 = vpack.c.bf16 %v2190_v42, %v2189_v24  ;;  %v2366_v42 = vld [vmem:[%s5003_s9 + $0x148] sm:$0xff] }
 0x497   : > { %2975 = vmatprep.mubr.msk.f32.mxu0 %vm1757_vm10, %v1732_v55  ;;  %v2194_v55 = vld [vmem:[%s5003_s9 + $0x98] sm:$0xff] }
 0x498   : > { %v3652_v32 = vpack.c.bf16 %v2194_v55, %v2193_v52  ;;  %v2371_v52 = vld [vmem:[%s5003_s9 + $0x170] sm:$0xff]  ;;  %v2372_v55 = vld [vmem:[%s5003_s9 + $0x178] sm:$0xff] }
 0x49a   : > { %1934 = vmatmul.mubr.f32.gmra.mrb[22].mxu0 %v1731_v33  ;;  %v2103_v33 = vld [vmem:[%s5003_s9 + $0x20] sm:$0xff] }
 0x49b   : > { %3144 = vmatprep.mubr.msk.f32.mxu0 %vm4101_vm11, %v4098_v0  ;;  %v3631_v35 = vpack.c.bf16 %v2104_v34, %v2103_v33  ;;  %v2448_v33 = vld [vmem:[%s5003_s9 + $0x180] sm:$0xff]  ;;  %v2449_v34 = vld [vmem:[%s5003_s9 + $0x188] sm:$0xff] }
 0x539   : > { %v1830_v6 = vpop.f32.mrb[16].mxu0 }
 0x53a   : > { %v1832_v7 = vpop.f32.mrb[17].mxu0 }
 0x53b   : > { %v2279_v7 = vld [vmem:[%s5003_s9 + $0xe8] sm:$0xff] }
 0x53d   : > { %v1835_v8 = vpop.f32.mrb[18].mxu0 }
 0x53e   : > { %v1837_v9 = vpop.f32.mrb[19].mxu0 }
 0x53f   : > { %v2280_v9 = vld [vmem:[%s5003_s9 + $0xf0] sm:$0xff] }
 0x569   : > { %v1930_v10 = vpop.f32.mrb[20].mxu0 }
 0x56a   : > { %v1939_v11 = vmax.f32 %v1830_v6, %v1930_v10  ;;  %v1932_v12 = vpop.f32.mrb[21].mxu0  ;;  %v2278_v6 = vld [vmem:[%s5003_s9 + $0xe0] sm:$0xff]  ;;  %v2281_v10 = vld [vmem:[%s5003_s9 + $0xf8] sm:$0xff] }
 0x56b   : > { %v2282_v12 = vld [vmem:[%s5003_s9 + $0x100] sm:$0xff] }
 0x56d   : > { %v1935_v13 = vpop.f32.mrb[22].mxu0 }
 0x56e   : > { %v1940_v14 = vmax.f32 %v1835_v8, %v1935_v13  ;;  %v1937_v15 = vpop.f32.mrb[23].mxu0  ;;  %v3667_v8 = vpack.c.bf16 %v2279_v7, %v2278_v6  ;;  %v2283_v13 = vld [vmem:[%s5003_s9 + $0x108] sm:$0xff]  ;;  %v2543_v7 = vld [vmem:[%s5003_s9 + $0x220] sm:$0xff] }
 0x56f   : > { %v2284_v15 = vld [vmem:[%s5003_s9 + $0x110] sm:$0xff] }
 0x570   : > { %v3617_v20 = vpack.c.bf16 %v1940_v14, %v1939_v11  ;;  %v3670_v11 = vpack.c.bf16 %v2281_v10, %v2280_v9  ;;  %v3673_v14 = vpack.c.bf16 %v2283_v13, %v2282_v12  ;;  %v3676_v17 = vpack.c.bf16 %v2285_v16, %v2284_v15  ;;  %v2622_v9 = vld [vmem:[%s5005_s11] sm:$0xff]  ;;  %v2623_v10 = vld [vmem:[%s5005_s11 + $0x8] sm:$0xff]  ;;  %v2545_v15 = vld [vmem:[%s5003_s9 + $0x230] sm:$0xff] }
 0x571   : > { %v3733_v13 = vpack.c.bf16 %v2623_v10, %v2622_v9  ;;  %v2546_v16 = vld [vmem:[%s5003_s9 + $0x238] sm:$0xff] }
 0x572   : > { %3619 = vmatpush3.bf16.msk.msra.mxu0 %vm4464_vm7, %v3617_v20  ;;  %3623 = vmatpush3.bf16.msk.msra.mxu1 %vm4464_vm7, %v3617_v20  ;;  %v3679_v20 = vpack.c.bf16 %v2362_v19, %v2361_v18  ;;  %v2626_v18 = vld [vmem:[%s5005_s11 + $0x20] sm:$0xff]  ;;  %v2627_v19 = vld [vmem:[%s5005_s11 + $0x28] sm:$0xff] }
 0x573   : > { %3642 = vmatprep.subr.bf16.mxu1 %v4099_v1  ;;  %3624 = vmatprep.subr.bf16.mxu0 %v4099_v1 }
 0x575   : > { %3145 = vmatmul.mubr.msk.f32.vlgmr.msra.gmra.mrb[24].mxu0 %vm1942_vm12, %v1941_v21  ;;  %3152 = vmatmul.mubr.msk.f32.vlgmr.msra.gmra.mrb[16].mxu1 %vm1942_vm12, %v2978_v22  ;;  %v2363_v21 = vld [vmem:[%s5003_s9 + $0x130] sm:$0xff]  ;;  %v2364_v22 = vld [vmem:[%s5003_s9 + $0x138] sm:$0xff] }
 0x576   : > { %3644 = vmatpush3.bf16.msra.mxu1 %v3643_v23  ;;  %3626 = vmatpush3.bf16.msra.mxu0 %v3625_v25  ;;  %v3682_v24 = vpack.c.bf16 %v2364_v22, %v2363_v21  ;;  %v2365_v25 = vld [vmem:[%s5003_s9 + $0x140] sm:$0xff]  ;;  %v3739_v21 = vpack.c.bf16 %v2627_v19, %v2626_v18  ;;  %v2628_v22 = vld [vmem:[%s5005_s11 + $0x30] sm:$0xff] }
 0x577   : > { %3645 = vmatprep.subr.bf16.mxu1 %v4099_v1  ;;  %3627 = vmatprep.subr.bf16.mxu0 %v4099_v1  ;;  %v3685_v26 = vpack.c.bf16 %v2366_v42, %v2365_v25  ;;  %v2630_v42 = vld [vmem:[%s5005_s11 + $0x40] sm:$0xff] }
 0x578   : > { %3205 = vmatprep.mubr.msk.f32.mxu1 %vm4101_vm11, %v4098_v0  ;;  %3178 = vmatprep.mubr.msk.f32.mxu0 %vm4101_vm11, %v4098_v0 }
 0x57a   : > { %3647 = vmatpush3.bf16.msra.mxu1 %v3646_v28  ;;  %3629 = vmatpush3.bf16.msra.mxu0 %v3628_v29  ;;  %v2368_v28 = vld [vmem:[%s5003_s9 + $0x158] sm:$0xff] }
 0x57b   : > { %3648 = vmatprep.subr.bf16.mxu1 %v4099_v1  ;;  %3630 = vmatprep.subr.bf16.mxu0 %v4099_v1  ;;  %v3688_v29 = vpack.c.bf16 %v2368_v28, %v2367_v27  ;;  %v2632_v28 = vld [vmem:[%s5005_s11 + $0x50] sm:$0xff] }
 0x57e   : > { %3650 = vmatpush3.bf16.msra.mxu1 %v3649_v31  ;;  %3632 = vmatpush3.bf16.msra.mxu0 %v3631_v35  ;;  %v3691_v31 = vpack.c.bf16 %v2370_v53, %v2369_v30  ;;  %v3697_v35 = vpack.c.bf16 %v2449_v34, %v2448_v33  ;;  %v2634_v53 = vld [vmem:[%s5005_s11 + $0x60] sm:$0xff] }
 0x57f   : > { %3651 = vmatprep.subr.bf16.mxu1 %v4099_v1  ;;  %3633 = vmatprep.subr.bf16.mxu0 %v4099_v1  ;;  %v2097_v34 = vld [vmem:[%s5004_s10] sm:$0x1] }
 0x582   : > { %3653 = vmatpush3.bf16.msra.mxu1 %v3652_v32  ;;  %3635 = vmatpush3.bf16.msra.mxu0 %v3634_v38  ;;  %v3694_v32 = vpack.c.bf16 %v2372_v55, %v2371_v52  ;;  %v2636_v55 = vld [vmem:[%s5005_s11 + $0x70] sm:$0xff] }
 0x583   : > { %3654 = vmatprep.subr.bf16.mxu1 %v4099_v1  ;;  %3636 = vmatprep.subr.bf16.mxu0 %v4099_v1 }
 0x586   : > { %3656 = vmatpush3.bf16.msra.mxu1 %v3655_v41  ;;  %3638 = vmatpush3.bf16.msra.mxu0 %v3637_v45  ;;  %v2453_v41 = vld [vmem:[%s5003_s9 + $0x1a8] sm:$0xff]  ;;  %v2455_v45 = vld [vmem:[%s5003_s9 + $0x1b8] sm:$0xff] }
 0x587   : > { %3657 = vmatprep.subr.bf16.mxu1 %v4099_v1  ;;  %3639 = vmatprep.subr.bf16.mxu0 %v4099_v1  ;;  %v3703_v43 = vpack.c.bf16 %v2453_v41, %v2452_v40  ;;  %v3706_v46 = vpack.c.bf16 %v2455_v45, %v2454_v44  ;;  %v3754_v41 = vpack.c.bf16 %v2714_v37, %v2713_v36  ;;  %v2715_v44 = vld [vmem:[%s5007_s13 + $0x10] sm:$0xff]  ;;  %v2716_v45 = vld [vmem:[%s5007_s13 + $0x18] sm:$0xff] }
 0x58a   : > { %3659 = vmatpush3.bf16.msra.mxu1 %v3658_v48  ;;  %3641 = vmatpush3.bf16.msra.mxu0 %v3640_v51  ;;  %v2457_v48 = vld [vmem:[%s5003_s9 + $0x1c8] sm:$0xff]  ;;  %v2459_v51 = vld [vmem:[%s5003_s9 + $0x1d8] sm:$0xff] }
 0x58b   : > { %3660 = vmatprep.subr.bf16.mxu1 %v4099_v1  ;;  %3732 = vmatprep.subr.bf16.mxu0 %v4099_v1  ;;  %v3709_v49 = vpack.c.bf16 %v2457_v48, %v2456_v47  ;;  %v2717_v47 = vld [vmem:[%s5007_s13 + $0x20] sm:$0xff]  ;;  %v2718_v48 = vld [vmem:[%s5007_s13 + $0x28] sm:$0xff] }
 0x648   : > { %v2015_v54 = vpop.f32.mrb[24].mxu0  ;;  %v2090_v56 = vpop.f32.mrb[16].mxu1 }
 0x649   : > { %v2094_v57 = vmax.f32 %v2015_v54, %v2090_v56  ;;  %v3146_v58 = vpop.f32.mrb[25].mxu0  ;;  %v3153_v59 = vpop.f32.mrb[17].mxu1  ;;  %v3712_v54 = vpack.c.bf16 %v2459_v51, %v2458_v50  ;;  %v2535_v56 = vld [vmem:[%s5003_s9 + $0x1e0] sm:$0xff]  ;;  %v2719_v50 = vld [vmem:[%s5007_s13 + $0x30] sm:$0xff]  ;;  %v2720_v51 = vld [vmem:[%s5007_s13 + $0x38] sm:$0xff] }
 0x64a   : > { %v2537_v59 = vld [vmem:[%s5003_s9 + $0x1f0] sm:$0xff] }
 0x64b   : > { %2096 = vst.msk [vmem:[#allocation3] sm:$0x3f] %vm2095_vm13, %v2094_v57  ;;  %v2536_v57 = vld [vmem:[%s5003_s9 + $0x1e8] sm:$0xff] }
 0x64c   : > { %v3715_v58 = vpack.c.bf16 %v2536_v57, %v2535_v56  ;;  %v2721_v56 = vld [vmem:[%s5007_s13 + $0x40] sm:$0xff]  ;;  %v2722_v57 = vld [vmem:[%s5007_s13 + $0x48] sm:$0xff] }
 0x652   : > { %v2186_v3 = vld [vmem:[#allocation3 + $0x1] sm:$0x1]  ;;  %v2098_v4 = vld [vmem:[#allocation3] sm:$0x1]  ;;  %v2273_v23 = vld [vmem:[#allocation3 + $0x2] sm:$0x1] }
 0x653   : > { %3206 = vmatmul.mubr.msk.f32.vlgmr.msra.gmra.mrb[18].mxu1 %vm2111_vm14, %v2186_v3  ;;  %3179 = vmatmul.mubr.msk.f32.vlgmr.msra.gmra.mrb[26].mxu0 %vm2111_vm14, %v2098_v4  ;;  %v2360_v38 = vld [vmem:[#allocation3 + $0x3] sm:$0x1]  ;;  %v2447_v61 = vld [vmem:[#allocation3 + $0x4] sm:$0x1]  ;;  %v3721_v3 = vpack.c.bf16 %v2540_v2, %v2539_v63 }
 0x654   : > { %3662 = vmatpush3.bf16.msra.mxu1 %v3661_v62  ;;  %3232 = vmatprep.mubr.msk.f32.mxu1 %vm4101_vm11, %v4098_v0  ;;  %v3718_v62 = vpack.c.bf16 %v2538_v60, %v2537_v59  ;;  %v2541_v4 = vld [vmem:[%s5003_s9 + $0x210] sm:$0xff] }
 0x655   : > { %3663 = vmatprep.subr.bf16.mxu1 %v4099_v1  ;;  %3346 = vmatprep.mubr.msk.f32.mxu0 %vm4101_vm11, %v4098_v0  ;;  %v2723_v59 = vld [vmem:[%s5007_s13 + $0x50] sm:$0xf] }
 0x656   : > { %3734 = vmatpush3.bf16.msra.mxu0 %v3733_v13 }
 0x657   : > { %3735 = vmatprep.subr.bf16.mxu0 %v4099_v1 }
 0x658   : > { %3665 = vmatpush3.bf16.msra.mxu1 %v3664_v5  ;;  %v2542_v5 = vld [vmem:[%s5003_s9 + $0x218] sm:$0xff] }
 0x659   : > { %3666 = vmatprep.subr.bf16.mxu1 %v4099_v1  ;;  %v3724_v6 = vpack.c.bf16 %v2542_v5, %v2541_v4 }
 0x65c   : > { %3668 = vmatpush3.bf16.msra.mxu1 %v3667_v8  ;;  %v2544_v8 = vld [vmem:[%s5003_s9 + $0x228] sm:$0xff] }
 0x65d   : > { %3669 = vmatprep.subr.bf16.mxu1 %v4099_v1  ;;  %v3727_v12 = vpack.c.bf16 %v2544_v8, %v2543_v7 }
 0x660   : > { %3671 = vmatpush3.bf16.msra.mxu1 %v3670_v11  ;;  %v2624_v11 = vld [vmem:[%s5005_s11 + $0x10] sm:$0xff] }
 0x661   : > { %3672 = vmatprep.subr.bf16.mxu1 %v4099_v1 }
 0x664   : > { %3674 = vmatpush3.bf16.msra.mxu1 %v3673_v14  ;;  %v2625_v14 = vld [vmem:[%s5005_s11 + $0x18] sm:$0xff] }
 0x665   : > { %3675 = vmatprep.subr.bf16.mxu1 %v4099_v1 }
 0x668   : > { %3677 = vmatpush3.bf16.msra.mxu1 %v3676_v17  ;;  %v3736_v17 = vpack.c.bf16 %v2625_v14, %v2624_v11 }
 0x669   : > { %3678 = vmatprep.subr.bf16.mxu1 %v4099_v1 }
 0x66a   : > { %3737 = vmatpush3.bf16.msra.mxu0 %v3736_v17 }
 0x66b   : > { %3233 = vmatmul.mubr.msk.f32.vlgmr.msra.gmra.mrb[18].mxu1 %vm2111_vm14, %v2273_v23  ;;  %3738 = vmatprep.subr.bf16.mxu0 %v4099_v1  ;;  %v2629_v23 = vld [vmem:[%s5005_s11 + $0x38] sm:$0xff] }
 0x66c   : > { %3680 = vmatpush3.bf16.msra.mxu1 %v3679_v20  ;;  %3259 = vmatprep.mubr.msk.f32.mxu1 %vm4101_vm11, %v4098_v0  ;;  %v3730_v20 = vpack.c.bf16 %v2546_v16, %v2545_v15  ;;  %v3742_v25 = vpack.c.bf16 %v2629_v23, %v2628_v22 }
 0x66d   : > { %3681 = vmatprep.subr.bf16.mxu1 %v4099_v1 }
 0x66e   : > { %3740 = vmatpush3.bf16.msra.mxu0 %v3739_v21 }
 0x66f   : > { %3741 = vmatprep.subr.bf16.mxu0 %v4099_v1 }
 0x670   : > { %3683 = vmatpush3.bf16.msra.mxu1 %v3682_v24  ;;  %v2534_v24 = vld [vmem:[#allocation3 + $0x5] sm:$0x1] }
 0x671   : > { %3684 = vmatprep.subr.bf16.mxu1 %v4099_v1 }
 0x672   : > { %3743 = vmatpush3.bf16.msra.mxu0 %v3742_v25 }
 0x673   : > { %3744 = vmatprep.subr.bf16.mxu0 %v4099_v1 }
 0x674   : > { %3686 = vmatpush3.bf16.msra.mxu1 %v3685_v26  ;;  %v2631_v26 = vld [vmem:[%s5005_s11 + $0x48] sm:$0xff] }
 0x675   : > { %3687 = vmatprep.subr.bf16.mxu1 %v4099_v1  ;;  %v3745_v27 = vpack.c.bf16 %v2631_v26, %v2630_v42 }
 0x677   : > { %3746 = vmatpush3.bf16.msra.mxu0 %v3745_v27 }
 0x678   : > { %3689 = vmatpush3.bf16.msra.mxu1 %v3688_v29  ;;  %v2633_v29 = vld [vmem:[%s5005_s11 + $0x58] sm:$0xff]  ;;  %3747 = vmatprep.subr.bf16.mxu0 %v4099_v1 }
 0x679   : > { %3690 = vmatprep.subr.bf16.mxu1 %v4099_v1  ;;  %v3748_v30 = vpack.c.bf16 %v2633_v29, %v2632_v28 }
 0x67b   : > { %3749 = vmatpush3.bf16.msra.mxu0 %v3748_v30 }
 0x67c   : > { %3692 = vmatpush3.bf16.msra.mxu1 %v3691_v31  ;;  %3750 = vmatprep.subr.bf16.mxu0 %v4099_v1  ;;  %v2635_v31 = vld [vmem:[%s5005_s11 + $0x68] sm:$0xff] }
 0x67d   : > { %3693 = vmatprep.subr.bf16.mxu1 %v4099_v1  ;;  %v3751_v52 = vpack.c.bf16 %v2635_v31, %v2634_v53 }
 0x67f   : > { %3752 = vmatpush3.bf16.msra.mxu0 %v3751_v52 }
 0x680   : > { %3695 = vmatpush3.bf16.msra.mxu1 %v3694_v32  ;;  %3344 = vmatprep.subr.mxu0 %v4098_v0 }
 0x681   : > { %3696 = vmatprep.subr.bf16.mxu1 %v4099_v1 }
 0x683   : > { %3260 = vmatmul.mubr.msk.f32.vlgmr.msra.gmra.mrb[18].mxu1 %vm2111_vm14, %v2360_v38  ;;  %3345 = vmatpush3.msra.mxu0 %v2636_v55 }
 0x684   : > { %3698 = vmatpush3.bf16.msra.mxu1 %v3697_v35  ;;  %3286 = vmatprep.mubr.msk.f32.mxu1 %vm4101_vm11, %v4098_v0 }
 0x685   : > { %3699 = vmatprep.subr.bf16.mxu1 %v4099_v1  ;;  %3753 = vmatprep.subr.bf16.mxu0 %v4099_v1 }
 0x688   : > { %3701 = vmatpush3.bf16.msra.mxu1 %v3700_v39 }
 0x689   : > { %3702 = vmatprep.subr.bf16.mxu1 %v4099_v1 }
 0x68c   : > { %3704 = vmatpush3.bf16.msra.mxu1 %v3703_v43 }
 0x68d   : > { %3705 = vmatprep.subr.bf16.mxu1 %v4099_v1 }
 0x690   : > { %3707 = vmatpush3.bf16.msra.mxu1 %v3706_v46  ;;  %v3757_v46 = vpack.c.bf16 %v2716_v45, %v2715_v44 }
 0x691   : > { %3708 = vmatprep.subr.bf16.mxu1 %v4099_v1 }
 0x694   : > { %3710 = vmatpush3.bf16.msra.mxu1 %v3709_v49  ;;  %v3760_v49 = vpack.c.bf16 %v2718_v48, %v2717_v47 }
 0x695   : > { %3711 = vmatprep.subr.bf16.mxu1 %v4099_v1 }
 0x698   : > { %3713 = vmatpush3.bf16.msra.mxu1 %v3712_v54  ;;  %v3763_v54 = vpack.c.bf16 %v2720_v51, %v2719_v50 }
 0x699   : > { %3714 = vmatprep.subr.bf16.mxu1 %v4099_v1 }
 0x69b   : > { %3287 = vmatmul.mubr.msk.f32.vlgmr.msra.gmra.mrb[18].mxu1 %vm2111_vm14, %v2447_v61 }
 0x69c   : > { %3716 = vmatpush3.bf16.msra.mxu1 %v3715_v58  ;;  %3313 = vmatprep.mubr.msk.f32.mxu1 %vm4101_vm11, %v4098_v0  ;;  %v3766_v58 = vpack.c.bf16 %v2722_v57, %v2721_v56 }
 0x69d   : > { %3717 = vmatprep.subr.bf16.mxu1 %v4099_v1 }
 0x6a0   : > { %3719 = vmatpush3.bf16.msra.mxu1 %v3718_v62 }
 0x6a1   : > { %3720 = vmatprep.subr.bf16.mxu1 %v4099_v1 }
 0x6a4   : > { %3722 = vmatpush3.bf16.msra.mxu1 %v3721_v3 }
 0x6a5   : > { %3723 = vmatprep.subr.bf16.mxu1 %v4099_v1 }
 0x6a8   : > { %3725 = vmatpush3.bf16.msra.mxu1 %v3724_v6 }
 0x6a9   : > { %3726 = vmatprep.subr.bf16.mxu1 %v4099_v1 }
 0x6ac   : > { %3728 = vmatpush3.bf16.msra.mxu1 %v3727_v12 }
 0x6ad   : > { %3729 = vmatprep.subr.bf16.mxu1 %v4099_v1 }
 0x6b0   : > { %3731 = vmatpush3.bf16.msra.mxu1 %v3730_v20 }
 0x6b3   : > { %3314 = vmatmul.mubr.msk.f32.vlgmr.msra.gmra.mrb[18].mxu1 %vm2111_vm14, %v2534_v24 }
 0x726   : > { %v2181_v32 = vpop.f32.mrb[26].mxu0 }
 0x727   : > { %v3180_v33 = vpop.f32.mrb[27].mxu0  ;;  %v2185_v35 = vadd.f32 %v2181_v32, %v2097_v34 }
 0x786   : > { %v2616_v38 = vpop.f32.mrb[18].mxu1 }
 0x787   : > { %v3781_v39 = vadd.f32 %v2616_v38, %v2185_v35  ;;  %v3315_v40 = vpop.f32.mrb[19].mxu1 }
 0x789   : > { %v2621_v43 = vmax.f32 %v3781_v39, 0.0 }
 0x78b   : > { %3347 = vmatmul.mubr.msk.f32.vlgmr.msra.gmra.mrb[28].mxu0 %vm2638_vm15, %v2621_v43 }
 0x78c   : > { %3755 = vmatpush3.bf16.msra.mxu0 %v3754_v41  ;;  %3371 = vmatprep.mubr.msk.f32.mxu0 %vm4101_vm11, %v4098_v0 }
 0x78d   : > { %3756 = vmatprep.subr.bf16.mxu0 %v4099_v1 }
 0x790   : > { %3758 = vmatpush3.bf16.msra.mxu0 %v3757_v46 }
 0x791   : > { %3759 = vmatprep.subr.bf16.mxu0 %v4099_v1 }
 0x794   : > { %3761 = vmatpush3.bf16.msra.mxu0 %v3760_v49 }
 0x795   : > { %3762 = vmatprep.subr.bf16.mxu0 %v4099_v1 }
 0x798   : > { %3764 = vmatpush3.bf16.msra.mxu0 %v3763_v54 }
 0x799   : > { %3765 = vmatprep.subr.bf16.mxu0 %v4099_v1  ;;  %v2637_v1 = vld [vmem:[%s5054_s30] sm:$0x1] }
 0x79c   : > { %3767 = vmatpush3.bf16.msra.mxu0 %v3766_v58 }
 0x79d   : > { %3369 = vmatprep.subr.mxu0 %v4098_v0  ;;  %v2724_v0 = vld [vmem:[%s5056_s18] sm:$0x1] }
 0x7a0   : > { %3370 = vmatpush3.msk.msra.mxu0 %vm1195_vm6, %v2723_v59 }
 0x85e   : > { %v2708_v60 = vpop.f32.mrb[28].mxu0 }
 0x85f   : > { %v2709_v61 = vadd.f32 %v2708_v60, %v2637_v1  ;;  %v3348_v62 = vpop.f32.mrb[29].mxu0 }
 0x861   : > { %v2712_v63 = vmax.f32 %v2709_v61, 0.0 }
 0x863   : > { %3372 = vmatmul.mubr.msk.f32.vlgmr.msra.gmra.mrb[30].mxu0 %vm1360_vm9, %v2712_v63 }
 0x936   : > { %v2797_v2 = vpop.f32.mrb[30].mxu0 }
 0x937   : > { %v2798_v3 = vadd.f32 %v2797_v2, %v2724_v0  ;;  %v3373_v4 = vpop.f32.mrb[31].mxu0 }
 0x939   : > { %2802 = vst.msk [vmem:[%s545_s29] sm:$0x1] %vm2801_vm0, %v2798_v3 }
 0x93a   : > { %4027 = shalt.err (!%p4024_p0)
}
 0x93b   : > { %s4028_s30 = scalar_lea.hbm %s4952_s14, 16  ;;  %s4032_s27 = scalar_lea.hbm %s5057_s26, 32 }
 0x93c   : > { %p4029_p6 = scmp.ne.s32.totalorder %s4952_s14, %s4028_s30  ;;  %p4033_p13 = scmp.lt.u32.totalorder %s4952_s14, %s5057_s26 }
 0x93d   : > { %p4034_p12 = scmp.lt.u32.totalorder %s4032_s27, %s4028_s30  ;;  %p4036_p2 = scmp.lt.u32.totalorder %s4028_s30, %s4952_s14 }
 0x93e   : > { %p4030_p9 = pnand %p4029_p6, %p5058_p3 }
 0x93f   : > { %p4035_p1 = por %p4034_p12, %p4033_p13 }
 0x940   : > { %p4031_p10 = pneg %p4030_p9 }
 0x941   : > { %p4037_p4 = por %p4036_p2, %p4035_p1 }
 0x943   : > { %p4038_p7 = pnand %p4037_p4, %p4031_p10 }
 0x945   : > { %4041 = shalt.err (!%p4038_p7)
}
 0x946   : > { %3830 = dma.vmem_to_hbm [thread:$0]  (%p5058_p3), %s4954_s20, 16, %s4952_s14, %s2804_s12  }
 0x947 PF: > { %s5059_s29 = sld [smem:[#allocation19_spill]]  ;;  %s5060_s17 = sld [smem:[#allocation17_spill]] }
 0x948   : > { %s5061_s15 = sld [smem:[#allocation23_spill]] }
 0x94d   : > { %p3857_p8 = scmp.ge.s32.totalorder %s5059_s29, 2  ;;  %s2828_s24 = sand.u32 1, %s5060_s17  }
 0x94e   : > { %p5062_p11 = scmp.ne.s32.totalorder %s5061_s15, 0  ;;  %s2829_s22 = scalar_lea.sflag [#allocation6], %s2828_s24 }
 0x950   : > { %p3846_p5 = pnand %p3857_p8, %p5062_p11 }
 0x952   : > { %4071 = dma.done.wait (!%p3846_p5), %s2829_s22, 16  }
 0x953   : > { %4073 = vsyncadd (!%p3846_p5), %s2829_s22, 4294967280  ;;  %s5063_s21 = sld [smem:[#allocation20_spill]]  ;;  %s5064_s28 = sld [smem:[#allocation18_spill]] }
 0x954   : > { %s5065_s20 = sld [smem:[#allocation21_spill]]  ;;  %s5066_s18 = smov %s4080_s19 }
 0x959   : > { %p28_p0 = scmp.ge.s32.totalorder %s5063_s21, 4   ;;  %s5067_s19 = smov %s5064_s28 }
 0x95b   :  { %30 = sbr.rel (!%p28_p0) target bundleno = 11 (0xb), region = 140 }
 0x962   :  { %2833 = vsyncpa [#allocation5], 1 }
 0x963   :  { %2835 = vsyncpa [#allocation5 + $0x1], 1 }
 0x964   :  { %2836 = vsyncpa [#allocation8], 1 }
 0x965   :  { %2837 = vsyncpa [#allocation11], 1 }
 0x966   :  { %2838 = vsyncpa [#allocation6], 1 }
 0x967   :  { %2840 = vsyncpa [#allocation6 + $0x1], 1 }

</bundles_post_ra>
